<compile_context>
chip_gen: v7x
topology: tpu7x:2x2x1
jax: 0.10.0
libtpu: 0.0.40
codegen_flags: <defaults>
</compile_context>

<pallas_src>
import jax
import jax.numpy as jnp
from jax import lax
from jax.experimental import pallas as pl
from jax.experimental.pallas import tpu as pltpu

EPS = 1e-5


# ----------------------------------------------------------------------------
# Host-side constant construction (computed ONCE per (params, shape))
# ----------------------------------------------------------------------------
def _stacked_weight(w_oihw, N, W):
    """OIHW (Cout,Cin,3,3) conv weight -> (N*W*Cin, 3*N*W*Cout) panel matrix.

    Row    = (n, w_in, cin)         (matches the (H, N*W*C) slab column order)
    Column = (dh, n, w_out, cout)   (lane block dh = kernel tap along H)
    Entry  = weight[cout, cin, dh, w_in - w_out + 1] when same n and
             |w_in - w_out| <= 1, else 0  (zero W-padding is implicit).
    """
    c_out, c_in, k_h, k_w = w_oihw.shape
    w_perm = jnp.transpose(w_oihw.astype(jnp.float32), (2, 1, 3, 0))  # (kh,cin,kw,cout)
    wi = jnp.arange(W)[None, :, None]
    wo = jnp.arange(W)[None, None, :]
    kk = jnp.arange(k_w)[:, None, None]
    delta_w = (wi == wo + kk - 1).astype(jnp.float32)                 # (kw, W, W)
    eye_n = jnp.eye(N, dtype=jnp.float32)
    # wm[dh, n_in, w_in, cin, n_out, w_out, cout]
    wm = jnp.einsum('ab,kio,dckt->daicbot', eye_n, delta_w, w_perm)
    wm = jnp.transpose(wm, (1, 2, 3, 0, 4, 5, 6))   # (n,w_in,cin, dh, n,w_out,cout)
    return wm.reshape(N * W * c_in, k_h * N * W * c_out)


def _tile_chan(v, NW):
    # (C,) per-channel vector -> (NW*C,) row matching the slab column order.
    return jnp.tile(v.astype(jnp.float32), NW)


def build_residual_forward(params, x_shape):
    """Build a jitted forward(x_nchw) for fixed params / input shape."""
    N, C, H, W = x_shape
    NW, NWC, NHW = N * W, N * W * C, N * H * W
    assert H >= 2
    assert NW & (NW - 1) == 0, "lane roll-tree BN reduction needs N*W power of two"
    # TODO(synk): non-power-of-two N*W needs a same-channel averaging matmul
    # (or padded lanes) for the BN statistics instead of the roll tree.

    w1m = _stacked_weight(params["conv1_w"], N, W)            # (NWC, 3*NWC)
    w2m = _stacked_weight(params["conv2_w"], N, W)
    # Pack the six per-channel vectors into ONE (8, NWC) input (one DMA,
    # one VMEM tile, instead of six tiny padded tiles).
    vecs = jnp.concatenate(
        [jnp.stack([_tile_chan(params["conv1_b"], NW),
                    _tile_chan(params["bn1_g"], NW),
                    _tile_chan(params["bn1_b"], NW),
                    _tile_chan(params["conv2_b"], NW),
                    _tile_chan(params["bn2_g"], NW),
                    _tile_chan(params["bn2_b"], NW)], axis=0),
         jnp.zeros((2, NWC), jnp.float32)], axis=0)           # (8, NWC)

    def residual_kernel(x_ref, w1_ref, w2_ref, vecs_ref, out_ref):
        x = x_ref[...]                       # (H, NWC) lane-dense input slab
        v = vecs_ref[...]                    # (8, NWC) packed per-channel rows
        zrow = jnp.zeros((1, NWC), jnp.float32)
        inv_nhw = 1.0 / float(NHW)

        def conv_bn(inp, w_ref, bias, gamma, beta, relu):
            # ---- 3x3 conv (pad 1, stride 1): ONE MXU matmul ----------------
            # Lane panel dh of the result holds the H-tap-dh contribution
            # computed from the unshifted input rows; W taps / channel mixing
            # / zero W-padding are folded into the host-built weight matrix.
            yp = jnp.dot(inp, w_ref[...], preferred_element_type=jnp.float32,
                         precision=lax.Precision.HIGHEST)     # (H, 3*NWC)
            p_top = yp[:, :NWC]              # dh = 0: needs input row h-1
            p_mid = yp[:, NWC:2 * NWC]       # dh = 1: input row h
            p_bot = yp[:, 2 * NWC:]          # dh = 2: needs input row h+1
            # Row alignment via static sublane slice+concat (exact zero
            # boundary rows) — no shift matmuls, no lane concatenate.
            y = (jnp.concatenate([zrow, p_top[:H - 1, :]], axis=0)
                 + p_mid
                 + jnp.concatenate([p_bot[1:, :], zrow], axis=0)
                 + bias)

            # ---- BatchNorm2d (training mode, biased var) --------------------
            # One-pass stats stacked to (2, NWC); same-channel lanes
            # (lane % C) summed with a log2 roll-tree on the XLU, then folded
            # into a per-column scale/shift (2 VPU ops / element).
            stats = jnp.concatenate(
                [jnp.sum(y, axis=0, keepdims=True),
                 jnp.sum(y * y, axis=0, keepdims=True)], axis=0)   # (2, NWC)
            sh = C
            while sh < NWC:                  # static unroll: log2(N*W) steps
                stats = stats + pltpu.roll(stats, sh, axis=1)
                sh *= 2
            stats = stats * inv_nhw
            mean = stats[0:1, :]
            var = stats[1:2, :] - mean * mean
            scale = gamma * lax.rsqrt(var + EPS)
            offs = beta - mean * scale
            y = y * scale + offs
            return jnp.maximum(y, 0.0) if relu else y

        y1 = conv_bn(x, w1_ref, v[0:1], v[1:2], v[2:3], relu=True)   # relu(bn1(conv1 x))
        y2 = conv_bn(y1, w2_ref, v[3:4], v[4:5], v[5:6], relu=False)  # bn2(conv2 y1)
        out_ref[...] = jnp.maximum(y2 + x, 0.0)                       # relu(Y + X)

    vmem = pl.BlockSpec(memory_space=pltpu.MemorySpace.VMEM)
    pc = pl.pallas_call(
        residual_kernel,
        out_shape=jax.ShapeDtypeStruct((H, NWC), jnp.float32),   # lane-dense output
        in_specs=[vmem] * 4,
        out_specs=vmem,
    )
    # TODO(synk): for large N*H*W*C this must become a gridded multi-pass
    # pipeline (conv1+stats -> bn1/relu/conv2+stats -> bn2+add) — training-mode
    # BN needs global batch stats before feeding conv2 — with a 'parallel'
    # grid axis (use both v7x TensorCores), tiles budgeted against v7x's
    # 64 MiB VMEM, and more batch/height folded onto the sublane axis so the
    # conv matmul M is a multiple of 256 (MXU utilization on v6e/v7x).

    @jax.jit
    def forward(x_nchw):
        # NCHW -> (H, N*W*C) slab and back: layout plumbing fused by XLA
        # inside the same jit as the kernel call.
        x_k = jnp.transpose(x_nchw.astype(jnp.float32), (2, 0, 3, 1)).reshape(H, NWC)
        out = pc(x_k, w1m, w2m, vecs)
        return jnp.transpose(out.reshape(H, N, W, C), (1, 3, 0, 2))

    return forward


# ----------------------------------------------------------------------------
# Pure-JAX reference mirroring the PyTorch training-mode forward
# ----------------------------------------------------------------------------
def residual_reference(x_nchw, params):
    x = jnp.transpose(x_nchw, (0, 2, 3, 1)).astype(jnp.float32)

    def conv(inp, w_oihw, b):
        w = jnp.transpose(w_oihw, (2, 3, 1, 0))
        y = lax.conv_general_dilated(inp, w, (1, 1), ((1, 1), (1, 1)),
                                     dimension_numbers=("NHWC", "HWIO", "NHWC"),
                                     precision=lax.Precision.HIGHEST)
        return y + b

    def bn(y, g, bt):
        mean = jnp.mean(y, axis=(0, 1, 2), keepdims=True)
        var = jnp.mean((y - mean) ** 2, axis=(0, 1, 2), keepdims=True)
        return (y - mean) * lax.rsqrt(var + EPS) * g + bt

    y = jax.nn.relu(bn(conv(x, params["conv1_w"], params["conv1_b"]),
                       params["bn1_g"], params["bn1_b"]))
    y = bn(conv(y, params["conv2_w"], params["conv2_b"]),
           params["bn2_g"], params["bn2_b"])
    return jnp.transpose(jax.nn.relu(y + x), (0, 3, 1, 2))


if __name__ == "__main__":
    # TODO(synk): use_1x1conv=True / stride>1 path not implemented — the
    # original PyTorch forward would itself crash there (bn1/bn2 only exist
    # when use_1x1conv=False), so only the well-defined default path is done.
    N, C, H, W = 2, 4, 16, 16          # in_channels = out_channels = 4
    key = jax.random.PRNGKey(0)
    kx, k1, k2, k3, k4, k5, k6, k7, k8 = jax.random.split(key, 9)

    x = jax.random.normal(kx, (N, C, H, W), jnp.float32)
    params = {
        "conv1_w": 0.2 * jax.random.normal(k1, (C, C, 3, 3), jnp.float32),  # OIHW
        "conv1_b": 0.1 * jax.random.normal(k2, (C,), jnp.float32),
        "conv2_w": 0.2 * jax.random.normal(k3, (C, C, 3, 3), jnp.float32),
        "conv2_b": 0.1 * jax.random.normal(k4, (C,), jnp.float32),
        "bn1_g": 1.0 + 0.1 * jax.random.normal(k5, (C,), jnp.float32),
        "bn1_b": 0.1 * jax.random.normal(k6, (C,), jnp.float32),
        "bn2_g": 1.0 + 0.1 * jax.random.normal(k7, (C,), jnp.float32),
        "bn2_b": 0.1 * jax.random.normal(k8, (C,), jnp.float32),
    }

    forward = build_residual_forward(params, (N, C, H, W))   # constants built once
    out = jax.block_until_ready(forward(x))
    ref = jax.block_until_ready(residual_reference(x, params))

    assert out.shape == (N, C, H, W), out.shape
    # Tolerance covers one-pass (sum / sum-of-squares) BN variance vs. the
    # reference's two-pass variance, plus matmul pass-decomposition ordering.
    err = float(jnp.max(jnp.abs(out - ref)))
    assert err < 1e-3, err
    print("KERNEL_OK")
</pallas_src>

<mosaic_0001>
module attributes {stable_mosaic.version = 11 : i64} {
  func.func @residual_kernel(%arg0: memref<16x128xf32, #tpu.memory_space<vmem>>, %arg1: memref<128x384xf32, #tpu.memory_space<vmem>>, %arg2: memref<128x384xf32, #tpu.memory_space<vmem>>, %arg3: memref<8x128xf32, #tpu.memory_space<vmem>>, %arg4: memref<16x128xf32, #tpu.memory_space<vmem>>) attributes {dimension_semantics = [], scalar_prefetch = 0 : i64, scratch_operands = 0 : i64, tpu.core_type = #tpu.core_type<tc>} {
    %c0 = arith.constant 0 : index
    %c0_0 = arith.constant 0 : index
    %0 = vector.load %arg0[%c0, %c0_0] : memref<16x128xf32, #tpu.memory_space<vmem>>, vector<16x128xf32>
    %c0_1 = arith.constant 0 : index
    %c0_2 = arith.constant 0 : index
    %1 = vector.load %arg3[%c0_1, %c0_2] : memref<8x128xf32, #tpu.memory_space<vmem>>, vector<8x128xf32>
    %cst = arith.constant 0.000000e+00 : f32
    %2 = vector.broadcast %cst : f32 to vector<1x128xf32>
    %3 = vector.extract_strided_slice %1 {offsets = [0, 0], sizes = [1, 128], strides = [1, 1]} : vector<8x128xf32> to vector<1x128xf32>
    %4 = vector.extract_strided_slice %1 {offsets = [1, 0], sizes = [1, 128], strides = [1, 1]} : vector<8x128xf32> to vector<1x128xf32>
    %5 = vector.extract_strided_slice %1 {offsets = [2, 0], sizes = [1, 128], strides = [1, 1]} : vector<8x128xf32> to vector<1x128xf32>
    %c0_3 = arith.constant 0 : index
    %c0_4 = arith.constant 0 : index
    %6 = vector.load %arg1[%c0_3, %c0_4] : memref<128x384xf32, #tpu.memory_space<vmem>>, vector<128x384xf32>
    %cst_5 = arith.constant dense<0.000000e+00> : vector<16x384xf32>
    %7 = tpu.matmul %0, %6, %cst_5 {dimension_numbers = #tpu.dot_dimension_numbers<[1], [0], [0], [1], [0, 0, 1, 1], [], []>, precision = #tpu.contract_precision<fp32>} : vector<16x128xf32>, vector<128x384xf32>, vector<16x384xf32> -> vector<16x384xf32>
    %8 = vector.extract_strided_slice %7 {offsets = [0, 0], sizes = [16, 128], strides = [1, 1]} : vector<16x384xf32> to vector<16x128xf32>
    %9 = vector.extract_strided_slice %7 {offsets = [0, 128], sizes = [16, 128], strides = [1, 1]} : vector<16x384xf32> to vector<16x128xf32>
    %10 = vector.extract_strided_slice %7 {offsets = [0, 256], sizes = [16, 128], strides = [1, 1]} : vector<16x384xf32> to vector<16x128xf32>
    %11 = vector.extract_strided_slice %8 {offsets = [0, 0], sizes = [15, 128], strides = [1, 1]} : vector<16x128xf32> to vector<15x128xf32>
    %12 = tpu.concatenate %2, %11 in 0 : vector<1x128xf32>, vector<15x128xf32> -> vector<16x128xf32>
    %13 = arith.addf %12, %9 : vector<16x128xf32>
    %14 = vector.extract_strided_slice %10 {offsets = [1, 0], sizes = [15, 128], strides = [1, 1]} : vector<16x128xf32> to vector<15x128xf32>
    %15 = tpu.concatenate %14, %2 in 0 : vector<15x128xf32>, vector<1x128xf32> -> vector<16x128xf32>
    %16 = arith.addf %13, %15 : vector<16x128xf32>
    %17 = vector.broadcast %3 : vector<1x128xf32> to vector<16x128xf32>
    %18 = arith.addf %16, %17 : vector<16x128xf32>
    %cst_6 = arith.constant dense<0.000000e+00> : vector<128xf32>
    %19 = vector.multi_reduction <add>, %18, %cst_6 [0] : vector<16x128xf32> to vector<128xf32>
    %20 = vector.shape_cast %19 : vector<128xf32> to vector<1x128xf32>
    %21 = arith.mulf %18, %18 : vector<16x128xf32>
    %cst_7 = arith.constant dense<0.000000e+00> : vector<128xf32>
    %22 = vector.multi_reduction <add>, %21, %cst_7 [0] : vector<16x128xf32> to vector<128xf32>
    %23 = vector.shape_cast %22 : vector<128xf32> to vector<1x128xf32>
    %24 = tpu.concatenate %20, %23 in 0 : vector<1x128xf32>, vector<1x128xf32> -> vector<2x128xf32>
    %c4_i32 = arith.constant 4 : i32
    %25 = tpu.dynamic_rotate %24 by %c4_i32 dim 1 : vector<2x128xf32>, i32 -> vector<2x128xf32>
    %26 = arith.addf %24, %25 : vector<2x128xf32>
    %c8_i32 = arith.constant 8 : i32
    %27 = tpu.dynamic_rotate %26 by %c8_i32 dim 1 : vector<2x128xf32>, i32 -> vector<2x128xf32>
    %28 = arith.addf %26, %27 : vector<2x128xf32>
    %c16_i32 = arith.constant 16 : i32
    %29 = tpu.dynamic_rotate %28 by %c16_i32 dim 1 : vector<2x128xf32>, i32 -> vector<2x128xf32>
    %30 = arith.addf %28, %29 : vector<2x128xf32>
    %c32_i32 = arith.constant 32 : i32
    %31 = tpu.dynamic_rotate %30 by %c32_i32 dim 1 : vector<2x128xf32>, i32 -> vector<2x128xf32>
    %32 = arith.addf %30, %31 : vector<2x128xf32>
    %c64_i32 = arith.constant 64 : i32
    %33 = tpu.dynamic_rotate %32 by %c64_i32 dim 1 : vector<2x128xf32>, i32 -> vector<2x128xf32>
    %34 = arith.addf %32, %33 : vector<2x128xf32>
    %cst_8 = arith.constant 0.001953125 : f32
    %35 = vector.broadcast %cst_8 : f32 to vector<2x128xf32>
    %36 = arith.mulf %34, %35 : vector<2x128xf32>
    %37 = vector.extract_strided_slice %36 {offsets = [0, 0], sizes = [1, 128], strides = [1, 1]} : vector<2x128xf32> to vector<1x128xf32>
    %38 = vector.extract_strided_slice %36 {offsets = [1, 0], sizes = [1, 128], strides = [1, 1]} : vector<2x128xf32> to vector<1x128xf32>
    %39 = arith.mulf %37, %37 : vector<1x128xf32>
    %40 = arith.subf %38, %39 : vector<1x128xf32>
    %cst_9 = arith.constant 9.99999974E-6 : f32
    %41 = vector.broadcast %cst_9 : f32 to vector<1x128xf32>
    %42 = arith.addf %40, %41 : vector<1x128xf32>
    %43 = math.rsqrt %42 : vector<1x128xf32>
    %44 = arith.mulf %4, %43 : vector<1x128xf32>
    %45 = arith.mulf %37, %44 : vector<1x128xf32>
    %46 = arith.subf %5, %45 : vector<1x128xf32>
    %47 = vector.broadcast %44 : vector<1x128xf32> to vector<16x128xf32>
    %48 = arith.mulf %18, %47 : vector<16x128xf32>
    %49 = vector.broadcast %46 : vector<1x128xf32> to vector<16x128xf32>
    %50 = arith.addf %48, %49 : vector<16x128xf32>
    %cst_10 = arith.constant 0.000000e+00 : f32
    %51 = vector.broadcast %cst_10 : f32 to vector<16x128xf32>
    %52 = arith.maximumf %50, %51 : vector<16x128xf32>
    %53 = vector.extract_strided_slice %1 {offsets = [3, 0], sizes = [1, 128], strides = [1, 1]} : vector<8x128xf32> to vector<1x128xf32>
    %54 = vector.extract_strided_slice %1 {offsets = [4, 0], sizes = [1, 128], strides = [1, 1]} : vector<8x128xf32> to vector<1x128xf32>
    %55 = vector.extract_strided_slice %1 {offsets = [5, 0], sizes = [1, 128], strides = [1, 1]} : vector<8x128xf32> to vector<1x128xf32>
    %c0_11 = arith.constant 0 : index
    %c0_12 = arith.constant 0 : index
    %56 = vector.load %arg2[%c0_11, %c0_12] : memref<128x384xf32, #tpu.memory_space<vmem>>, vector<128x384xf32>
    %cst_13 = arith.constant dense<0.000000e+00> : vector<16x384xf32>
    %57 = tpu.matmul %52, %56, %cst_13 {dimension_numbers = #tpu.dot_dimension_numbers<[1], [0], [0], [1], [0, 0, 1, 1], [], []>, precision = #tpu.contract_precision<fp32>} : vector<16x128xf32>, vector<128x384xf32>, vector<16x384xf32> -> vector<16x384xf32>
    %58 = vector.extract_strided_slice %57 {offsets = [0, 0], sizes = [16, 128], strides = [1, 1]} : vector<16x384xf32> to vector<16x128xf32>
    %59 = vector.extract_strided_slice %57 {offsets = [0, 128], sizes = [16, 128], strides = [1, 1]} : vector<16x384xf32> to vector<16x128xf32>
    %60 = vector.extract_strided_slice %57 {offsets = [0, 256], sizes = [16, 128], strides = [1, 1]} : vector<16x384xf32> to vector<16x128xf32>
    %61 = vector.extract_strided_slice %58 {offsets = [0, 0], sizes = [15, 128], strides = [1, 1]} : vector<16x128xf32> to vector<15x128xf32>
    %62 = tpu.concatenate %2, %61 in 0 : vector<1x128xf32>, vector<15x128xf32> -> vector<16x128xf32>
    %63 = arith.addf %62, %59 : vector<16x128xf32>
    %64 = vector.extract_strided_slice %60 {offsets = [1, 0], sizes = [15, 128], strides = [1, 1]} : vector<16x128xf32> to vector<15x128xf32>
    %65 = tpu.concatenate %64, %2 in 0 : vector<15x128xf32>, vector<1x128xf32> -> vector<16x128xf32>
    %66 = arith.addf %63, %65 : vector<16x128xf32>
    %67 = vector.broadcast %53 : vector<1x128xf32> to vector<16x128xf32>
    %68 = arith.addf %66, %67 : vector<16x128xf32>
    %cst_14 = arith.constant dense<0.000000e+00> : vector<128xf32>
    %69 = vector.multi_reduction <add>, %68, %cst_14 [0] : vector<16x128xf32> to vector<128xf32>
    %70 = vector.shape_cast %69 : vector<128xf32> to vector<1x128xf32>
    %71 = arith.mulf %68, %68 : vector<16x128xf32>
    %cst_15 = arith.constant dense<0.000000e+00> : vector<128xf32>
    %72 = vector.multi_reduction <add>, %71, %cst_15 [0] : vector<16x128xf32> to vector<128xf32>
    %73 = vector.shape_cast %72 : vector<128xf32> to vector<1x128xf32>
    %74 = tpu.concatenate %70, %73 in 0 : vector<1x128xf32>, vector<1x128xf32> -> vector<2x128xf32>
    %c4_i32_16 = arith.constant 4 : i32
    %75 = tpu.dynamic_rotate %74 by %c4_i32_16 dim 1 : vector<2x128xf32>, i32 -> vector<2x128xf32>
    %76 = arith.addf %74, %75 : vector<2x128xf32>
    %c8_i32_17 = arith.constant 8 : i32
    %77 = tpu.dynamic_rotate %76 by %c8_i32_17 dim 1 : vector<2x128xf32>, i32 -> vector<2x128xf32>
    %78 = arith.addf %76, %77 : vector<2x128xf32>
    %c16_i32_18 = arith.constant 16 : i32
    %79 = tpu.dynamic_rotate %78 by %c16_i32_18 dim 1 : vector<2x128xf32>, i32 -> vector<2x128xf32>
    %80 = arith.addf %78, %79 : vector<2x128xf32>
    %c32_i32_19 = arith.constant 32 : i32
    %81 = tpu.dynamic_rotate %80 by %c32_i32_19 dim 1 : vector<2x128xf32>, i32 -> vector<2x128xf32>
    %82 = arith.addf %80, %81 : vector<2x128xf32>
    %c64_i32_20 = arith.constant 64 : i32
    %83 = tpu.dynamic_rotate %82 by %c64_i32_20 dim 1 : vector<2x128xf32>, i32 -> vector<2x128xf32>
    %84 = arith.addf %82, %83 : vector<2x128xf32>
    %cst_21 = arith.constant 0.001953125 : f32
    %85 = vector.broadcast %cst_21 : f32 to vector<2x128xf32>
    %86 = arith.mulf %84, %85 : vector<2x128xf32>
    %87 = vector.extract_strided_slice %86 {offsets = [0, 0], sizes = [1, 128], strides = [1, 1]} : vector<2x128xf32> to vector<1x128xf32>
    %88 = vector.extract_strided_slice %86 {offsets = [1, 0], sizes = [1, 128], strides = [1, 1]} : vector<2x128xf32> to vector<1x128xf32>
    %89 = arith.mulf %87, %87 : vector<1x128xf32>
    %90 = arith.subf %88, %89 : vector<1x128xf32>
    %cst_22 = arith.constant 9.99999974E-6 : f32
    %91 = vector.broadcast %cst_22 : f32 to vector<1x128xf32>
    %92 = arith.addf %90, %91 : vector<1x128xf32>
    %93 = math.rsqrt %92 : vector<1x128xf32>
    %94 = arith.mulf %54, %93 : vector<1x128xf32>
    %95 = arith.mulf %87, %94 : vector<1x128xf32>
    %96 = arith.subf %55, %95 : vector<1x128xf32>
    %97 = vector.broadcast %94 : vector<1x128xf32> to vector<16x128xf32>
    %98 = arith.mulf %68, %97 : vector<16x128xf32>
    %99 = vector.broadcast %96 : vector<1x128xf32> to vector<16x128xf32>
    %100 = arith.addf %98, %99 : vector<16x128xf32>
    %101 = arith.addf %100, %0 : vector<16x128xf32>
    %cst_23 = arith.constant 0.000000e+00 : f32
    %102 = vector.broadcast %cst_23 : f32 to vector<16x128xf32>
    %103 = arith.maximumf %101, %102 : vector<16x128xf32>
    %c0_24 = arith.constant 0 : index
    %c0_25 = arith.constant 0 : index
    %104 = vector.load %arg4[%c0_24, %c0_25] : memref<16x128xf32, #tpu.memory_space<vmem>>, vector<16x128xf32>
    tpu.vector_store %arg4[%c0_24, %c0_25], %103 {strides = array<i32>} : memref<16x128xf32, #tpu.memory_space<vmem>>, vector<16x128xf32>,
    return
  }
}

</mosaic_0001>

<bundles_post_ra>
// kernel: forward.1
= control target key start
LH: loop header
LB: loop body
LE: loop exit
PB: predicated region body
PF: predicated region fallthrough
CT: control target
= control target key end

     0   :  { %9 = vsyncpa [#allocation3], 0  ;;  %s5002_s15 = smov [#allocation2]   ;;  %s7174_s0 = inlined_call_operand.vmem [shape: f32[16,128], index: 0, kind: input, shape index: {}]   ;;  %s7175_s1 = inlined_call_operand.hbm [shape: f32[128,384], index: 1, kind: input, shape index: {}]   ;;  %s7176_s2 = inlined_call_operand.vmem [shape: f32[128,384], index: 2, kind: input, shape index: {}]   ;;  %s7177_s3 = inlined_call_operand.vmem [shape: f32[8,128], index: 3, kind: input, shape index: {}]   ;;  %s7178_s4 = inlined_call_operand.vmem [shape: f32[16,128], index: 4, kind: output, shape index: {}]  }
   0x1   :  { %s17_s16 = sshll.u32 %s5002_s15, 4  ;;  %s4978_s19 = scalar_lea.hbm %s7175_s1, 6144  ;;  %s18_s16 = int_to_ptr.vmem [resolvable:$true] %s17_s16 }
   0x2   :  { %p4979_p0 = scmp.ne.s32.totalorder %s7175_s1, %s4978_s19  ;;  %p4982_p1 = scmp.lt.u32.totalorder %s4978_s19, %s7175_s1 }
   0x4   :  { %p4984_p2 = pnand %p4982_p1, %p4979_p0 }
   0x6   :  { %4987 = shalt.err (!%p4984_p2)
}
   0x7   :  { %s4988_s24 = scalar_lea.vmem %s18_s16, 6144  ;;  %p4993_p4 = scmp.lt.s32.totalorder %s18_s16, %s18_s16 }
   0x8   :  { %p4989_p3 = scmp.ne.s32.totalorder %s18_s16, %s4988_s24  ;;  %p4994_p5 = scmp.lt.s32.totalorder %s4988_s24, %s4988_s24 }
   0xa   :  { %p4995_p6 = por %p4994_p5, %p4993_p4 }
   0xc   :  { %p4996_p7 = pnand %p4995_p6, %p4989_p3 }
   0xe   :  { %4999 = shalt.err (!%p4996_p7)
}
   0xf   :  { %s5003_s25 = smov 384   ;;  %s5004_s26 = smov 24  }
  0x10   :  { %23 = dma.hbm_to_vmem [thread:$0]  %s7175_s1, 6144, %s18_s16, [#allocation3], %s5003_s25, %s5003_s25, %s5004_s26  }
  0x11   :  { %5000 = dma.done.wait [#allocation3], 6144  }
  0x12   :  { %5001 = vsyncadd [#allocation3], 4294961152  ;;  %v7183_v0 = vmov 0.0   ;;  %v35_v1 = vld [vmem:[#allocation2 + $0x8] sm:$0xff]  ;;  %v38_v2 = vld [vmem:[#allocation2 + $0x20] sm:$0xff]  ;;  %vm1672_vm0 = vcmask 1040384  }
  0x13   :  { %178 = vmatprep.mubr.f32.mxu0 %v7183_v0  ;;  %v5049_v3 = vld [vmem:[#allocation2 + $0x10] sm:$0xff]  ;;  %v82_v4 = vand.u32 4294901760, %v35_v1  ;;  %v86_v5 = vand.u32 4294901760, %v38_v2  ;;  %v5051_v6 = vld [vmem:[#allocation2 + $0x28] sm:$0xff]  ;;  %v34_v8 = vld [vmem:[#allocation2] sm:$0xff]  ;;  %vm1683_vm1 = vcmask 1046528  }
  0x14   :  { %v7188_v7 = vand.u32 4294901760, %v5049_v3  ;;  %v37_v9 = vld [vmem:[#allocation2 + $0x18] sm:$0xff]  ;;  %v7187_v10 = vand.u32 4294901760, %v5051_v6  ;;  %v84_v11 = vand.u32 4294901760, %v34_v8  ;;  %v44_v14 = vld [vmem:[#allocation2 + $0x50] sm:$0xff]  ;;  %v5055_v15 = vld [vmem:[#allocation2 + $0x40] sm:$0xff] }
  0x15   :  { %v88_v12 = vand.u32 4294901760, %v37_v9  ;;  %v41_v13 = vld [vmem:[#allocation2 + $0x38] sm:$0xff]  ;;  %v5057_v16 = vpack.c.bf16 %v86_v5, %v82_v4  ;;  %v5059_v17 = vsub.f32 %v35_v1, %v82_v4  ;;  %v5061_v18 = vsub.f32 %v38_v2, %v86_v5  ;;  %v40_v21 = vld [vmem:[#allocation2 + $0x30] sm:$0xff]  ;;  %v43_v22 = vld [vmem:[#allocation2 + $0x48] sm:$0xff]  ;;  %s5006_s8 = smov 4   ;;  %s5007_s9 = smov 8  }
  0x16   :  { %v90_v19 = vand.u32 4294901760, %v41_v13  ;;  %v5063_v20 = vld [vmem:[#allocation2 + $0x58] sm:$0xff]  ;;  %v5069_v23 = vpack.c.bf16 %v7187_v10, %v7188_v7  ;;  %v5073_v25 = vsub.f32 %v34_v8, %v84_v11  ;;  %v47_v27 = vld [vmem:[#allocation2 + $0x68] sm:$0xff]  ;;  %v50_v28 = vld [vmem:[#allocation2 + $0x80] sm:$0xff]  ;;  %v94_v30 = vand.u32 4294901760, %v44_v14  ;;  %s5008_s10 = smov 16  }
  0x17   :  { %7497 = vst [vmem:[#allocation5_spill] sm:$0xff] %v5057_v16  ;;  %7498 = vst [vmem:[#allocation6_spill] sm:$0xff] %v5061_v18  ;;  %v5071_v24 = vpack.c.bf16 %v88_v12, %v84_v11  ;;  %v5075_v26 = vsub.f32 %v37_v9, %v88_v12  ;;  %v5077_v29 = vld [vmem:[#allocation2 + $0x70] sm:$0xff]  ;;  %4135 = vmatprep.subr.bf16.mxu0 %v5057_v16  ;;  %v7186_v32 = vand.u32 4294901760, %v5055_v15  ;;  %v7185_v33 = vand.u32 4294901760, %v5063_v20  ;;  %v5084_v34 = vld [vmem:[#allocation2 + $0x88] sm:$0xff] }
  0x18   :  { %7499 = vst [vmem:[#allocation7_spill] sm:$0xff] %v5069_v23  ;;  %7501 = vst [vmem:[#allocation9_spill] sm:$0xff] %v5073_v25  ;;  %v5080_v31 = vsub.f32 %v41_v13, %v90_v19  ;;  %4327 = vmatprep.subr.bf16.mxu1 %v5069_v23  ;;  %v92_v35 = vand.u32 4294901760, %v40_v21  ;;  %v96_v36 = vand.u32 4294901760, %v43_v22  ;;  %v98_v37 = vand.u32 4294901760, %v47_v27  ;;  %v46_v39 = vld [vmem:[#allocation2 + $0x60] sm:$0xff] }
  0x19   :  { %7500 = vst [vmem:[#allocation8_spill] sm:$0xff] %v5071_v24  ;;  %4137 = vmatpush1.bf16.msra.mxu0 %v5071_v24  ;;  %v102_v38 = vand.u32 4294901760, %v50_v28  ;;  %v49_v40 = vld [vmem:[#allocation2 + $0x78] sm:$0xff]  ;;  %4329 = vmatpush3.bf16.msra.mxu1 %v5069_v23  ;;  %v5089_v41 = vpack.c.bf16 %v94_v30, %v90_v19  ;;  %v5091_v42 = vsub.f32 %v44_v14, %v94_v30  ;;  %v7182_v44 = vand.u32 4294901760, %v5077_v29  ;;  %v56_v46 = vld [vmem:[#allocation2 + $0xb0] sm:$0xff]  ;;  %v5100_v47 = vld [vmem:[#allocation2 + $0xa0] sm:$0xff] }
  0x1a   :  { %v5097_v43 = vpack.c.bf16 %v7185_v33, %v7186_v32  ;;  %v53_v45 = vld [vmem:[#allocation2 + $0x98] sm:$0xff]  ;;  %v5102_v48 = vpack.c.bf16 %v96_v36, %v92_v35  ;;  %v5104_v49 = vsub.f32 %v40_v21, %v92_v35  ;;  %v5106_v50 = vsub.f32 %v43_v22, %v96_v36  ;;  %v52_v53 = vld [vmem:[#allocation2 + $0x90] sm:$0xff]  ;;  %v55_v62 = vld [vmem:[#allocation2 + $0xa8] sm:$0xff]  ;;  %s5009_s11 = smov 32   ;;  %s5010_s12 = smov 64  }
  0x1b   :  { %7502 = vst [vmem:[#allocation10_spill] sm:$0xff] %v5089_v41  ;;  %v5108_v51 = vpack.c.bf16 %v102_v38, %v98_v37  ;;  %v5110_v52 = vld [vmem:[#allocation2 + $0xb8] sm:$0xff]  ;;  %4139 = vmatprep.subr.bf16.mxu0 %v5089_v41  ;;  %v5114_v54 = vsub.f32 %v47_v27, %v98_v37  ;;  %v5116_v55 = vsub.f32 %v50_v28, %v102_v38  ;;  %v7181_v56 = vand.u32 4294901760, %v5084_v34  ;;  %v59_v63 = vld [vmem:[#allocation2 + $0xc8] sm:$0xff]  ;;  %v62_v8 = vld [vmem:[#allocation2 + $0xe0] sm:$0xff] }
  0x1c   :  { %7503 = vst [vmem:[#allocation11_spill] sm:$0xff] %v5097_v43  ;;  %7504 = vst [vmem:[#allocation12_spill] sm:$0xff] %v5102_v48  ;;  %4331 = vmatprep.subr.bf16.mxu1 %v5097_v43  ;;  %v100_v57 = vand.u32 4294901760, %v46_v39  ;;  %v104_v58 = vand.u32 4294901760, %v49_v40  ;;  %v106_v59 = vand.u32 4294901760, %v53_v45  ;;  %v110_v60 = vand.u32 4294901760, %v56_v46 }
  0x1d   :  { %7505 = vst [vmem:[#allocation13_spill] sm:$0xff] %v5108_v51  ;;  %4141 = vmatpush1.bf16.msra.mxu0 %v5102_v48  ;;  %v7180_v61 = vand.u32 4294901760, %v5100_v47  ;;  %4333 = vmatpush3.bf16.msra.mxu1 %v5097_v43  ;;  %v5127_v1 = vpack.c.bf16 %v7181_v56, %v7182_v44  ;;  %v7179_v4 = vand.u32 4294901760, %v5110_v52  ;;  %v108_v5 = vand.u32 4294901760, %v52_v53  ;;  %v5132_v9 = vld [vmem:[#allocation2 + $0xd0] sm:$0xff]  ;;  %v5134_v11 = vld [vmem:[#allocation2 + $0xe8] sm:$0xff] }
  0x1e   :  { %4143 = vmatprep.subr.bf16.mxu0 %v5108_v51  ;;  %v5129_v2 = vsub.f32 %v46_v39, %v100_v57  ;;  %v5136_v12 = vpack.c.bf16 %v104_v58, %v100_v57  ;;  %v5138_v13 = vsub.f32 %v49_v40, %v104_v58  ;;  %v5140_v14 = vpack.c.bf16 %v110_v60, %v106_v59  ;;  %v58_v21 = vld [vmem:[#allocation2 + $0xc0] sm:$0xff]  ;;  %v61_v22 = vld [vmem:[#allocation2 + $0xd8] sm:$0xff]  ;;  %v80_v51 = vld [vmem:[#allocation2 + $0x170] sm:$0xff] }
  0x1f   :  { %7506 = vst [vmem:[#allocation14_spill] sm:$0xff] %v5127_v1  ;;  %v5142_v19 = vsub.f32 %v53_v45, %v106_v59  ;;  %4335 = vmatprep.subr.bf16.mxu1 %v5127_v1  ;;  %v5145_v27 = vsub.f32 %v56_v46, %v110_v60  ;;  %v5151_v28 = vpack.c.bf16 %v7179_v4, %v7180_v61  ;;  %v112_v30 = vand.u32 4294901760, %v55_v62  ;;  %v65_v40 = vld [vmem:[#allocation2 + $0xf8] sm:$0xff]  ;;  %v68_v45 = vld [vmem:[#allocation2 + $0x110] sm:$0xff]  ;;  %v5164_v59 = vld [vmem:[#allocation2 + $0x100] sm:$0xff] }
  0x20   :  { %7507 = vst [vmem:[#allocation15_spill] sm:$0xff] %v5136_v12  ;;  %7508 = vst [vmem:[#allocation16_spill] sm:$0xff] %v5140_v14  ;;  %v5153_v35 = vsub.f32 %v52_v53, %v108_v5  ;;  %v114_v36 = vand.u32 4294901760, %v59_v63  ;;  %v118_v37 = vand.u32 4294901760, %v62_v8  ;;  %v7190_v38 = vand.u32 4294901760, %v5132_v9  ;;  %v5166_v60 = vld [vmem:[#allocation2 + $0x118] sm:$0xff] }
  0x21   :  { %7509 = vst [vmem:[#allocation17_spill] sm:$0xff] %v5151_v28  ;;  %4145 = vmatpush1.bf16.msra.mxu0 %v5136_v12  ;;  %v7189_v39 = vand.u32 4294901760, %v5134_v11  ;;  %4337 = vmatpush3.bf16.msra.mxu1 %v5127_v1  ;;  %v5160_v46 = vpack.c.bf16 %v112_v30, %v108_v5  ;;  %v5162_v57 = vsub.f32 %v55_v62, %v112_v30  ;;  %v116_v53 = vand.u32 4294901760, %v58_v21  ;;  %v64_v4 = vld [vmem:[#allocation2 + $0xf0] sm:$0xff]  ;;  %v67_v5 = vld [vmem:[#allocation2 + $0x108] sm:$0xff]  ;;  %v74_v0 = vld [vmem:[#allocation2 + $0x140] sm:$0xff] }
  0x22   :  { %4147 = vmatprep.subr.bf16.mxu0 %v5140_v14  ;;  %v120_v58 = vand.u32 4294901760, %v61_v22  ;;  %4339 = vmatprep.subr.bf16.mxu1 %v5151_v28  ;;  %v5169_v61 = vpack.c.bf16 %v118_v37, %v114_v36  ;;  %v5171_v56 = vsub.f32 %v59_v63, %v114_v36  ;;  %v5173_v44 = vsub.f32 %v62_v8, %v118_v37  ;;  %v71_v30 = vld [vmem:[#allocation2 + $0x128] sm:$0xff]  ;;  %v73_v14 = vld [vmem:[#allocation2 + $0x138] sm:$0xff]  ;;  %v5211_v48 = vld [vmem:[#allocation2 + $0x160] sm:$0xff] }
  0x23   :  { %7510 = vst [vmem:[#allocation18_spill] sm:$0xff] %v5160_v46  ;;  %v5179_v62 = vpack.c.bf16 %v7189_v39, %v7190_v38  ;;  %v5183_v32 = vsub.f32 %v58_v21, %v116_v53  ;;  %v122_v7 = vand.u32 4294901760, %v65_v40  ;;  %v126_v63 = vand.u32 4294901760, %v68_v45  ;;  %v5190_v39 = vld [vmem:[#allocation2 + $0x130] sm:$0xff]  ;;  %v77_v1 = vld [vmem:[#allocation2 + $0x158] sm:$0xff] }
  0x24   :  { %7511 = vst [vmem:[#allocation19_spill] sm:$0xff] %v5169_v61  ;;  %v5181_v33 = vpack.c.bf16 %v120_v58, %v116_v53  ;;  %v5185_v10 = vsub.f32 %v61_v22, %v120_v58  ;;  %v124_v37 = vand.u32 4294901760, %v64_v4  ;;  %7514 = vst [vmem:[#allocation22_spill] sm:$0xff] %v5190_v39  ;;  %v128_v21 = vand.u32 4294901760, %v67_v5  ;;  %v5196_v58 = vld [vmem:[#allocation2 + $0x148] sm:$0xff]  ;;  %v76_v24 = vld [vmem:[#allocation2 + $0x150] sm:$0xff] }
  0x25   :  { %7512 = vst [vmem:[#allocation20_spill] sm:$0xff] %v5179_v62  ;;  %4149 = vmatpush1.bf16.msra.mxu0 %v5160_v46  ;;  %4341 = vmatpush3.bf16.msra.mxu1 %v5151_v28  ;;  %v5194_v38 = vsub.f32 %v65_v40, %v122_v7  ;;  %v130_v22 = vand.u32 4294901760, %v71_v30  ;;  %v134_v53 = vand.u32 4294901760, %v74_v0  ;;  %7515 = vst [vmem:[#allocation23_spill] sm:$0xff] %v5196_v58  ;;  %v70_v46 = vld [vmem:[#allocation2 + $0x120] sm:$0xff]  ;;  %v7517_v12 = vand.u32 4294901760, %v5164_v59 }
  0x26   :  { %7513 = vst [vmem:[#allocation21_spill] sm:$0xff] %v5181_v33  ;;  %4151 = vmatprep.subr.bf16.mxu0 %v5169_v61  ;;  %4343 = vmatprep.subr.bf16.mxu1 %v5179_v62  ;;  %v5199_v8 = vpack.c.bf16 %v126_v63, %v122_v7  ;;  %v5201_v36 = vsub.f32 %v68_v45, %v126_v63  ;;  %v7518_v28 = vand.u32 4294901760, %v5166_v60  ;;  %v5221_v63 = vld [vmem:[#allocation2 + $0x178] sm:$0xff]  ;;  %v132_v23 = vand.u32 4294901760, %v70_v46 }
  0x27   :  { %v5209_v40 = vsub.f32 %v64_v4, %v124_v37  ;;  %v5213_v43 = vpack.c.bf16 %v128_v21, %v124_v37  ;;  %v5215_v41 = vsub.f32 %v67_v5, %v128_v21  ;;  %v5217_v7 = vpack.c.bf16 %v134_v53, %v130_v22 }
  0x28   :  { %7516 = vst [vmem:[#allocation24_spill] sm:$0xff] %v5199_v8  ;;  %v5207_v61 = vpack.c.bf16 %v7518_v28, %v7517_v12  ;;  %v5219_v45 = vsub.f32 %v71_v30, %v130_v22  ;;  %v5224_v12 = vsub.f32 %v74_v0, %v134_v53  ;;  %v7227_v4 = vand.u32 4294901760, %v5190_v39  ;;  %v79_v22 = vld [vmem:[#allocation2 + $0x168] sm:$0xff] }
  0x29   :  { %7520 = vst [vmem:[#allocation26_spill] sm:$0xff] %v5213_v43  ;;  %7521 = vst [vmem:[#allocation27_spill] sm:$0xff] %v5215_v41  ;;  %4153 = vmatpush1.bf16.msra.mxu0 %v5181_v33  ;;  %v7226_v28 = vand.u32 4294901760, %v5196_v58  ;;  %4345 = vmatpush3.bf16.msra.mxu1 %v5179_v62  ;;  %v136_v5 = vand.u32 4294901760, %v73_v14  ;;  %v138_v37 = vand.u32 4294901760, %v77_v1  ;;  %v142_v30 = vand.u32 4294901760, %v80_v51 }
  0x2a   :  { %7519 = vst [vmem:[#allocation25_spill] sm:$0xff] %v5207_v61  ;;  %7522 = vst [vmem:[#allocation28_spill] sm:$0xff] %v5217_v7  ;;  %4155 = vmatprep.subr.bf16.mxu0 %v5199_v8  ;;  %4347 = vmatprep.subr.bf16.mxu1 %v5207_v61  ;;  %v5238_v53 = vsub.f32 %v70_v46, %v132_v23  ;;  %v7231_v33 = vand.u32 4294901760, %v5221_v63  ;;  %v140_v62 = vand.u32 4294901760, %v76_v24  ;;  %v31_v8 = vld [vmem:[%s7174_s0] sm:$0xff]  ;;  %v7529_v46 = vand.u32 4294901760, %v5211_v48 }
  0x2b   :  { %7523 = vst [vmem:[#allocation29_spill] sm:$0xff] %v5219_v45  ;;  %7524 = vst [vmem:[#allocation30_spill] sm:$0xff] %v5224_v12  ;;  %v5236_v0 = vpack.c.bf16 %v7226_v28, %v7227_v4  ;;  %v5244_v16 = vpack.c.bf16 %v136_v5, %v132_v23  ;;  %v5246_v21 = vsub.f32 %v73_v14, %v136_v5  ;;  %v7234_v23 = vand.u32 4294901760, %v5059_v17 }
  0x2c   :  { %7526 = vst [vmem:[#allocation32_spill] sm:$0xff] %v5238_v53  ;;  %v5248_v12 = vpack.c.bf16 %v142_v30, %v138_v37  ;;  %v5250_v39 = vsub.f32 %v77_v1, %v138_v37  ;;  %v5253_v28 = vsub.f32 %v80_v51, %v142_v30  ;;  %v5259_v4 = vpack.c.bf16 %v7231_v33, %v7529_v46 }
  0x2d   :  { %7525 = vst [vmem:[#allocation31_spill] sm:$0xff] %v5236_v0  ;;  %7527 = vst [vmem:[#allocation33_spill] sm:$0xff] %v5244_v16  ;;  %4157 = vmatpush1.bf16.msra.mxu0 %v5213_v43  ;;  %v144_v53 = vand.u32 4294901760, %v79_v22  ;;  %v5261_v58 = vsub.f32 %v76_v24, %v140_v62  ;;  %4349 = vmatpush3.bf16.msra.mxu1 %v5207_v61  ;;  %v5267_v14 = vand.u32 4294901760, %v31_v8  ;;  %v7533_v51 = vand.u32 4294901760, %v5049_v3  ;;  %v32_v24 = vld [vmem:[%s7174_s0 + $0x8] sm:$0xff] }
  0x2e   :  { %7528 = vst [vmem:[#allocation34_spill] sm:$0xff] %v5248_v12  ;;  %7530 = vst [vmem:[#allocation35_spill] sm:$0xff] %v5259_v4  ;;  %4159 = vmatprep.subr.bf16.mxu0 %v5217_v7  ;;  %4351 = vmatprep.subr.bf16.mxu1 %v5236_v0  ;;  %v7536_v46 = vand.u32 4294901760, %v5051_v6  ;;  %v7237_v1 = vand.u32 4294901760, %v5073_v25 }
  0x2f   :  { %7531 = vst [vmem:[#allocation36_spill] sm:$0xff] %v5261_v58  ;;  %7532 = vst [vmem:[#allocation37_spill] sm:$0xff] %v5267_v14  ;;  %v5272_v5 = vsub.f32 %v5049_v3, %v7533_v51  ;;  %v5278_v37 = vpack.c.bf16 %v144_v53, %v140_v62  ;;  %v5280_v30 = vsub.f32 %v79_v22, %v144_v53  ;;  %v7537_v51 = vand.u32 4294901760, %v5061_v18 }
  0x30   :  { %v5285_v33 = vsub.f32 %v5051_v6, %v7536_v46  ;;  %v204_v3 = vsub.f32 %v5059_v17, %v7234_v23  ;;  %v5295_v62 = vsub.f32 %v31_v8, %v5267_v14  ;;  %v210_v53 = vsub.f32 %v5073_v25, %v7237_v1 }
  0x31   :  { %7534 = vst [vmem:[#allocation38_spill] sm:$0xff] %v5272_v5  ;;  %7535 = vst [vmem:[#allocation39_spill] sm:$0xff] %v5278_v37  ;;  %v216_v7 = vsub.f32 %v5061_v18, %v7537_v51  ;;  %4161 = vmatpush1.bf16.msra.mxu0 %v5244_v16  ;;  %v5304_v23 = vand.u32 4294901760, %v32_v24  ;;  %4353 = vmatpush3.bf16.msra.mxu1 %v5236_v0  ;;  %v7541_v16 = vand.u32 4294901760, %v5272_v5  ;;  %v7543_v0 = vand.u32 4294901760, %v5075_v26 }
  0x32   :  { %7538 = vst [vmem:[#allocation40_spill] sm:$0xff] %v5295_v62  ;;  %4163 = vmatprep.subr.bf16.mxu0 %v5248_v12  ;;  %v205_v8 = vand.u32 4294901760, %v204_v3  ;;  %v5309_v22 = vand.u32 4294901760, %v5295_v62  ;;  %4355 = vmatprep.subr.bf16.mxu1 %v5259_v4  ;;  %v7542_v1 = vand.u32 4294901760, %v5285_v33  ;;  %v211_v43 = vand.u32 4294901760, %v210_v53 }
  0x33   :  { %7539 = vst [vmem:[#allocation41_spill] sm:$0xff] %v5304_v23  ;;  %v217_v51 = vand.u32 4294901760, %v216_v7  ;;  %v1091_v6 = vsub.f32 %v5272_v5, %v7541_v16  ;;  %v222_v12 = vsub.f32 %v5075_v26, %v7543_v0  ;;  %v5322_v7 = vsub.f32 %v32_v24, %v5304_v23 }
  0x34   :  { %7540 = vst [vmem:[#allocation42_spill] sm:$0xff] %v5309_v22  ;;  %v1098_v46 = vsub.f32 %v5285_v33, %v7542_v1  ;;  %v182_v61 = vsub.f32 %v5295_v62, %v5309_v22  ;;  %v7254_v16 = vand.u32 4294901760, %v5080_v31  ;;  %v7551_v22 = vand.u32 4294901760, %v5116_v55 }
  0x35   :  { %7544 = vst [vmem:[#allocation43_spill] sm:$0xff] %v5322_v7  ;;  %v4166_v3 = vpack.c.bf16 %v217_v51, %v205_v8  ;;  %v1092_v25 = vand.u32 4294901760, %v1091_v6  ;;  %4165 = vmatpush1.bf16.msra.mxu0 %v5278_v37  ;;  %v223_v18 = vand.u32 4294901760, %v222_v12  ;;  %v5329_v1 = vand.u32 4294901760, %v5322_v7  ;;  %4357 = vmatpush3.bf16.msra.mxu1 %v5259_v4 }
  0x36   :  { %v1099_v5 = vand.u32 4294901760, %v1098_v46  ;;  %v183_v0 = vand.u32 4294901760, %v182_v61  ;;  %v228_v24 = vsub.f32 %v5080_v31, %v7254_v16  ;;  %v7546_v6 = vand.u32 4294901760, %v5055_v15 }
  0x37   :  { %7545 = vst [vmem:[#allocation44_spill] sm:$0xff] %v5329_v1  ;;  %4167 = vmatprep.subr.bf16.mxu0 %v4166_v3  ;;  %v7547_v12 = vand.u32 4294901760, %v5063_v20  ;;  %v4168_v53 = vpack.c.bf16 %v223_v18, %v211_v43  ;;  %v193_v3 = vsub.f32 %v5322_v7, %v5329_v1  ;;  %v7548_v61 = vand.u32 4294901760, %v5091_v42 }
  0x38   :  { %v5339_v8 = vsub.f32 %v5055_v15, %v7546_v6  ;;  %v4358_v51 = vpack.c.bf16 %v1099_v5, %v1092_v25  ;;  %3746 = vmatprep.mubr.f32.mxu1 %v183_v0  ;;  %184 = vmatmul.mubr.f32.vlgmr.msra.gmra.mrb[0].mxu0 %v183_v0  ;;  %v229_v16 = vand.u32 4294901760, %v228_v24  ;;  %v7259_v4 = vand.u32 4294901760, %v5104_v49 }
  0x39   :  { %v5344_v46 = vsub.f32 %v5063_v20, %v7547_v12  ;;  %v240_v37 = vsub.f32 %v5091_v42, %v7548_v61  ;;  %4169 = vmatpush1.bf16.msra.mxu0 %v4168_v53  ;;  %v194_v20 = vand.u32 4294901760, %v193_v3  ;;  %v7264_v25 = vand.u32 4294901760, %v5106_v50 }
  0x3a   :  { %v7258_v15 = vand.u32 4294901760, %v5339_v8  ;;  %4359 = vmatprep.subr.bf16.mxu1 %v4358_v51  ;;  %v7267_v43 = vand.u32 4294901760, %v5114_v54  ;;  %v234_v24 = vsub.f32 %v5104_v49, %v7259_v4  ;;  %v7549_v12 = vmov 0.0  }
  0x3b   :  { %v7257_v6 = vand.u32 4294901760, %v5344_v46  ;;  %v241_v18 = vand.u32 4294901760, %v240_v37  ;;  %189 = vmatprep.mubr.f32.mxu0 %v7549_v12  ;;  %3747 = vmatmul.mubr.f32.vlgmr.msra.gmra.mrb[0].mxu1 %v194_v20  ;;  %v246_v3 = vsub.f32 %v5106_v50, %v7264_v25 }
  0x3c   :  { %v1105_v5 = vsub.f32 %v5339_v8, %v7258_v15  ;;  %v252_v61 = vsub.f32 %v5114_v54, %v7267_v43  ;;  %4361 = vmatpush3.bf16.msra.mxu1 %v4358_v51  ;;  %v235_v1 = vand.u32 4294901760, %v234_v24  ;;  %195 = vmatmul.mubr.f32.gmra.mrb[2].mxu0 %v194_v20  ;;  %v7552_v43 = vand.u32 4294901760, %v5084_v34 }
  0x3d   :  { %v1112_v0 = vsub.f32 %v5344_v46, %v7257_v6  ;;  %v4170_v37 = vpack.c.bf16 %v241_v18, %v229_v16  ;;  %v7550_v6 = vand.u32 4294901760, %v5077_v29  ;;  %v264_v16 = vsub.f32 %v5116_v55, %v7551_v22  ;;  %425 = vmatprep.mubr.f32.mxu0 %v7549_v12  ;;  %3781 = vmatprep.mubr.f32.mxu1 %v5267_v14 }
  0x3e   :  { %v1106_v4 = vand.u32 4294901760, %v1105_v5  ;;  %v247_v18 = vand.u32 4294901760, %v246_v3  ;;  %v253_v25 = vand.u32 4294901760, %v252_v61  ;;  %v5385_v62 = vsub.f32 %v5084_v34, %v7552_v43 }
  0x3f   :  { %v5376_v15 = vsub.f32 %v5077_v29, %v7550_v6  ;;  %v1113_v53 = vand.u32 4294901760, %v1112_v0  ;;  %4171 = vmatprep.subr.bf16.mxu0 %v4170_v37  ;;  %v265_v51 = vand.u32 4294901760, %v264_v16  ;;  %v7272_v6 = vand.u32 4294901760, %v5129_v2 }
  0x40   :  { %v7270_v5 = vand.u32 4294901760, %v5138_v13  ;;  %v4172_v22 = vpack.c.bf16 %v247_v18, %v235_v1  ;;  %v7288_v0 = vand.u32 4294901760, %v5385_v62  ;;  %v7271_v34 = vand.u32 4294901760, %v5142_v19 }
  0x41   :  { %v7291_v7 = vand.u32 4294901760, %v5376_v15  ;;  %v4362_v29 = vpack.c.bf16 %v1113_v53, %v1106_v4  ;;  %v4174_v43 = vpack.c.bf16 %v265_v51, %v253_v25  ;;  %v258_v4 = vsub.f32 %v5129_v2, %v7272_v6 }
  0x42   :  { %v270_v24 = vsub.f32 %v5138_v13, %v7270_v5  ;;  %v7273_v1 = vand.u32 4294901760, %v5145_v27  ;;  %4173 = vmatpush1.bf16.msra.mxu0 %v4172_v22  ;;  %v1126_v37 = vsub.f32 %v5385_v62, %v7288_v0  ;;  %v276_v25 = vsub.f32 %v5142_v19, %v7271_v34 }
  0x43   :  { %v1119_v20 = vsub.f32 %v5376_v15, %v7291_v7  ;;  %4363 = vmatprep.subr.bf16.mxu1 %v4362_v29  ;;  %v7553_v3 = vand.u32 4294901760, %v5100_v47  ;;  %4175 = vmatprep.subr.bf16.mxu0 %v4174_v43  ;;  %v259_v16 = vand.u32 4294901760, %v258_v4  ;;  %v7554_v51 = vand.u32 4294901760, %v5110_v52 }
  0x44   :  { %4365 = vmatpush3.bf16.msra.mxu1 %v4362_v29  ;;  %v271_v18 = vand.u32 4294901760, %v270_v24  ;;  %v288_v29 = vsub.f32 %v5145_v27, %v7273_v1  ;;  %v277_v5 = vand.u32 4294901760, %v276_v25  ;;  %v7274_v6 = vand.u32 4294901760, %v5153_v35 }
  0x45   :  { %v1120_v53 = vand.u32 4294901760, %v1119_v20  ;;  %v5412_v61 = vsub.f32 %v5100_v47, %v7553_v3  ;;  %v5420_v22 = vsub.f32 %v5110_v52, %v7554_v51  ;;  %v1127_v20 = vand.u32 4294901760, %v1126_v37 }
  0x46   :  { %v4176_v47 = vpack.c.bf16 %v271_v18, %v259_v16  ;;  %v289_v3 = vand.u32 4294901760, %v288_v29  ;;  %v7275_v4 = vand.u32 4294901760, %v5162_v57  ;;  %v282_v52 = vsub.f32 %v5153_v35, %v7274_v6 }
  0x47   :  { %v7278_v34 = vand.u32 4294901760, %v5412_v61  ;;  %v7276_v43 = vand.u32 4294901760, %v5420_v22  ;;  %v4366_v24 = vpack.c.bf16 %v1127_v20, %v1120_v53  ;;  %v7277_v37 = vand.u32 4294901760, %v5171_v56 }
  0x48   :  { %4177 = vmatpush1.bf16.msra.mxu0 %v4176_v47  ;;  %v4178_v25 = vpack.c.bf16 %v289_v3, %v277_v5  ;;  %v294_v53 = vsub.f32 %v5162_v57, %v7275_v4  ;;  %v7283_v18 = vand.u32 4294901760, %v5173_v44  ;;  %v283_v51 = vand.u32 4294901760, %v282_v52 }
  0x49   :  { %v1133_v1 = vsub.f32 %v5412_v61, %v7278_v34  ;;  %v1140_v16 = vsub.f32 %v5420_v22, %v7276_v43  ;;  %4367 = vmatprep.subr.bf16.mxu1 %v4366_v24  ;;  %v300_v20 = vsub.f32 %v5171_v56, %v7277_v37  ;;  %v7555_v47 = vand.u32 4294901760, %v5132_v9 }
  0x4a   :  { %4369 = vmatpush3.bf16.msra.mxu1 %v4366_v24  ;;  %4179 = vmatprep.subr.bf16.mxu0 %v4178_v25  ;;  %v295_v6 = vand.u32 4294901760, %v294_v53  ;;  %v312_v4 = vsub.f32 %v5173_v44, %v7283_v18  ;;  %v7279_v34 = vand.u32 4294901760, %v5183_v32  ;;  %v7558_v18 = vand.u32 4294901760, %v5166_v60 }
  0x4b   :  { %v1134_v29 = vand.u32 4294901760, %v1133_v1  ;;  %v5446_v5 = vsub.f32 %v5132_v9, %v7555_v47  ;;  %v1141_v3 = vand.u32 4294901760, %v1140_v16  ;;  %v7556_v1 = vand.u32 4294901760, %v5134_v11 }
  0x4c   :  { %v301_v43 = vand.u32 4294901760, %v300_v20  ;;  %v7281_v9 = vand.u32 4294901760, %v5185_v10  ;;  %v4180_v25 = vpack.c.bf16 %v295_v6, %v283_v51  ;;  %v313_v16 = vand.u32 4294901760, %v312_v4 }
  0x4d   :  { %v5454_v52 = vsub.f32 %v5134_v11, %v7556_v1  ;;  %v7280_v37 = vand.u32 4294901760, %v5446_v5  ;;  %v4370_v24 = vpack.c.bf16 %v1141_v3, %v1134_v29  ;;  %v306_v11 = vsub.f32 %v5183_v32, %v7279_v34 }
  0x4e   :  { %v318_v20 = vsub.f32 %v5185_v10, %v7281_v9  ;;  %v7286_v1 = vand.u32 4294901760, %v5194_v38  ;;  %4181 = vmatpush1.bf16.msra.mxu0 %v4180_v25  ;;  %v4182_v6 = vpack.c.bf16 %v313_v16, %v301_v43  ;;  %v7284_v29 = vand.u32 4294901760, %v5201_v36 }
  0x4f   :  { %v7282_v53 = vand.u32 4294901760, %v5454_v52  ;;  %v1147_v47 = vsub.f32 %v5446_v5, %v7280_v37  ;;  %4371 = vmatprep.subr.bf16.mxu1 %v4370_v24  ;;  %v7557_v51 = vand.u32 4294901760, %v5164_v59  ;;  %v307_v37 = vand.u32 4294901760, %v306_v11 }
  0x50   :  { %4373 = vmatpush3.bf16.msra.mxu1 %v4370_v24  ;;  %v319_v9 = vand.u32 4294901760, %v318_v20  ;;  %v324_v25 = vsub.f32 %v5194_v38, %v7286_v1  ;;  %4183 = vmatprep.subr.bf16.mxu0 %v4182_v6  ;;  %v336_v16 = vsub.f32 %v5201_v36, %v7284_v29  ;;  %v7287_v11 = vand.u32 4294901760, %v5209_v40 }
  0x51   :  { %v1154_v4 = vsub.f32 %v5454_v52, %v7282_v53  ;;  %v5477_v3 = vsub.f32 %v5164_v59, %v7557_v51  ;;  %v1148_v34 = vand.u32 4294901760, %v1147_v47  ;;  %v5489_v59 = vsub.f32 %v5166_v60, %v7558_v18 }
  0x52   :  { %v4184_v24 = vpack.c.bf16 %v319_v9, %v307_v37  ;;  %v325_v47 = vand.u32 4294901760, %v324_v25  ;;  %v7289_v20 = vand.u32 4294901760, %v5215_v41  ;;  %v337_v6 = vand.u32 4294901760, %v336_v16  ;;  %v7559_v9 = vld [vmem:[#allocation30_spill] sm:$0xff] }
  0x53   :  { %v1155_v43 = vand.u32 4294901760, %v1154_v4  ;;  %v7285_v53 = vand.u32 4294901760, %v5477_v3  ;;  %v7290_v29 = vand.u32 4294901760, %v5489_v59  ;;  %v330_v60 = vsub.f32 %v5209_v40, %v7287_v11 }
  0x54   :  { %4185 = vmatpush1.bf16.msra.mxu0 %v4184_v24  ;;  %v342_v37 = vsub.f32 %v5215_v41, %v7289_v20  ;;  %v7294_v18 = vand.u32 4294901760, %v5219_v45  ;;  %v4186_v25 = vpack.c.bf16 %v337_v6, %v325_v47  ;;  %v7560_v24 = vld [vmem:[#allocation22_spill] sm:$0xff] }
  0x55   :  { %v4374_v51 = vpack.c.bf16 %v1155_v43, %v1148_v34  ;;  %v1161_v4 = vsub.f32 %v5477_v3, %v7285_v53  ;;  %v7297_v34 = vand.u32 4294901760, %v7559_v9  ;;  %v1168_v16 = vsub.f32 %v5489_v59, %v7290_v29  ;;  %v7562_v29 = vld [vmem:[#allocation23_spill] sm:$0xff] }
  0x56   :  { %v7561_v53 = vand.u32 4294901760, %v7560_v24  ;;  %v331_v11 = vand.u32 4294901760, %v330_v60  ;;  %v343_v0 = vand.u32 4294901760, %v342_v37  ;;  %v348_v20 = vsub.f32 %v5219_v45, %v7294_v18  ;;  %4187 = vmatprep.subr.bf16.mxu0 %v4186_v25 }
  0x57   :  { %4375 = vmatprep.subr.bf16.mxu1 %v4374_v51  ;;  %v1162_v43 = vand.u32 4294901760, %v1161_v4  ;;  %v360_v47 = vsub.f32 %v7559_v9, %v7297_v34  ;;  %v1169_v6 = vand.u32 4294901760, %v1168_v16  ;;  %v7563_v7 = vand.u32 4294901760, %v7562_v29 }
  0x58   :  { %v5511_v1 = vsub.f32 %v7560_v24, %v7561_v53  ;;  %4377 = vmatpush3.bf16.msra.mxu1 %v4374_v51  ;;  %v7564_v51 = vld [vmem:[#allocation32_spill] sm:$0xff]  ;;  %v4188_v37 = vpack.c.bf16 %v343_v0, %v331_v11  ;;  %v349_v24 = vand.u32 4294901760, %v348_v20  ;;  %v7298_v18 = vand.u32 4294901760, %v5246_v21 }
  0x59   :  { %v5523_v53 = vsub.f32 %v7562_v29, %v7563_v7  ;;  %v7299_v60 = vand.u32 4294901760, %v7564_v51  ;;  %v361_v41 = vand.u32 4294901760, %v360_v47  ;;  %v4378_v45 = vpack.c.bf16 %v1169_v6, %v1162_v43 }
  0x5a   :  { %v7302_v4 = vand.u32 4294901760, %v5511_v1  ;;  %4189 = vmatpush1.bf16.msra.mxu0 %v4188_v37  ;;  %v366_v0 = vsub.f32 %v5246_v21, %v7298_v18  ;;  %v7301_v29 = vand.u32 4294901760, %v5250_v39  ;;  %v7303_v11 = vand.u32 4294901760, %v5253_v28 }
  0x5b   :  { %v7300_v16 = vand.u32 4294901760, %v5523_v53  ;;  %v354_v34 = vsub.f32 %v7564_v51, %v7299_v60  ;;  %v4190_v7 = vpack.c.bf16 %v361_v41, %v349_v24  ;;  %4379 = vmatprep.subr.bf16.mxu1 %v4378_v45  ;;  %v7565_v6 = vand.u32 4294901760, %v5211_v48 }
  0x5c   :  { %v1175_v25 = vsub.f32 %v5511_v1, %v7302_v4  ;;  %4381 = vmatpush3.bf16.msra.mxu1 %v4378_v45  ;;  %v367_v41 = vand.u32 4294901760, %v366_v0  ;;  %v372_v24 = vsub.f32 %v5250_v39, %v7301_v29  ;;  %v7567_v18 = vand.u32 4294901760, %v5221_v63 }
  0x5d   :  { %v1182_v43 = vsub.f32 %v5523_v53, %v7300_v16  ;;  %v355_v47 = vand.u32 4294901760, %v354_v34  ;;  %v5545_v37 = vsub.f32 %v5211_v48, %v7565_v6  ;;  %4191 = vmatprep.subr.bf16.mxu0 %v4190_v7  ;;  %v7304_v45 = vand.u32 4294901760, %v5261_v58 }
  0x5e   :  { %v1176_v20 = vand.u32 4294901760, %v1175_v25  ;;  %v384_v25 = vsub.f32 %v5253_v28, %v7303_v11  ;;  %v5556_v34 = vsub.f32 %v5221_v63, %v7567_v18  ;;  %v7310_v7 = vand.u32 4294901760, %v5280_v30 }
  0x5f   :  { %7566 = vst [vmem:[#allocation30_spill] sm:$0xff] %v5545_v37  ;;  %v1183_v60 = vand.u32 4294901760, %v1182_v43  ;;  %v7305_v48 = vand.u32 4294901760, %v5545_v37  ;;  %v4192_v0 = vpack.c.bf16 %v367_v41, %v355_v47  ;;  %v373_v6 = vand.u32 4294901760, %v372_v24 }
  0x60   :  { %v385_v16 = vand.u32 4294901760, %v384_v25  ;;  %v7311_v29 = vand.u32 4294901760, %v5556_v34  ;;  %v378_v63 = vsub.f32 %v5261_v58, %v7304_v45  ;;  %v390_v18 = vsub.f32 %v5280_v30, %v7310_v7  ;;  %v7568_v25 = vld [vmem:[#allocation6_spill] sm:$0xff] }
  0x61   :  { %v4382_v4 = vpack.c.bf16 %v1183_v60, %v1176_v20  ;;  %v1189_v11 = vsub.f32 %v5545_v37, %v7305_v48  ;;  %4193 = vmatpush1.bf16.msra.mxu0 %v4192_v0  ;;  %v4198_v45 = vpack.c.bf16 %v7568_v25, %v5059_v17  ;;  %v7569_v37 = vld [vmem:[#allocation38_spill] sm:$0xff] }
  0x62   :  { %v4194_v43 = vpack.c.bf16 %v385_v16, %v373_v6  ;;  %v1196_v47 = vsub.f32 %v5556_v34, %v7311_v29  ;;  %v379_v20 = vand.u32 4294901760, %v378_v63  ;;  %v391_v41 = vand.u32 4294901760, %v390_v18  ;;  %v7570_v16 = vld [vmem:[#allocation9_spill] sm:$0xff] }
  0x63   :  { %4383 = vmatprep.subr.bf16.mxu1 %v4382_v4  ;;  %v1190_v60 = vand.u32 4294901760, %v1189_v11  ;;  %v4390_v0 = vpack.c.bf16 %v5285_v33, %v7569_v37  ;;  %v4200_v6 = vpack.c.bf16 %v5075_v26, %v7570_v16  ;;  %v4202_v11 = vpack.c.bf16 %v5091_v42, %v5080_v31 }
  0x64   :  { %4385 = vmatpush3.bf16.msra.mxu1 %v4382_v4  ;;  %4195 = vmatprep.subr.bf16.mxu0 %v4194_v43  ;;  %v1197_v24 = vand.u32 4294901760, %v1196_v47  ;;  %v4196_v48 = vpack.c.bf16 %v391_v41, %v379_v20  ;;  %v4394_v4 = vpack.c.bf16 %v5344_v46, %v5339_v8  ;;  %v4204_v63 = vpack.c.bf16 %v5106_v50, %v5104_v49 }
  0x65   :  { %v4206_v18 = vpack.c.bf16 %v5116_v55, %v5114_v54  ;;  %v4208_v43 = vpack.c.bf16 %v5138_v13, %v5129_v2  ;;  %v7572_v47 = vand.u32 4294901760, %v7568_v25  ;;  %v7573_v20 = vand.u32 4294901760, %v7569_v37 }
  0x66   :  { %v4386_v58 = vpack.c.bf16 %v1197_v24, %v1190_v60  ;;  %4197 = vmatpush1.bf16.msra.mxu0 %v4196_v48  ;;  %v4398_v48 = vpack.c.bf16 %v5385_v62, %v5376_v15  ;;  %v7574_v41 = vand.u32 4294901760, %v5285_v33  ;;  %v7575_v7 = vand.u32 4294901760, %v7570_v16 }
  0x67   :  { %4199 = vmatprep.subr.bf16.mxu0 %v4198_v45  ;;  %v4210_v45 = vpack.c.bf16 %v5145_v27, %v5142_v19  ;;  %v7576_v29 = vand.u32 4294901760, %v5075_v26  ;;  %v7578_v25 = vand.u32 4294901760, %v5091_v42  ;;  %v7579_v37 = vand.u32 4294901760, %v5339_v8 }
  0x68   :  { %4387 = vmatprep.subr.bf16.mxu1 %v4386_v58  ;;  %v5605_v24 = vpack.c.bf16 %v7574_v41, %v7573_v20  ;;  %v7580_v33 = vand.u32 4294901760, %v5344_v46  ;;  %v7581_v16 = vand.u32 4294901760, %v5104_v49  ;;  %v7582_v26 = vand.u32 4294901760, %v5106_v50 }
  0x69   :  { %4389 = vmatpush3.bf16.msra.mxu1 %v4386_v58  ;;  %427 = vmatmul.mubr.f32.vlgmr.msra.gmra.mrb[0].mxu0 %v5267_v14  ;;  %v7571_v58 = vand.u32 4294901760, %v5059_v17  ;;  %v5612_v14 = vpack.c.bf16 %v7576_v29, %v7575_v7  ;;  %v7577_v17 = vand.u32 4294901760, %v5080_v31  ;;  %v7583_v31 = vand.u32 4294901760, %v5114_v54 }
  0x6a   :  { %4391 = vmatprep.subr.bf16.mxu1 %v4390_v0  ;;  %4201 = vmatpush1.bf16.msra.mxu0 %v4200_v6  ;;  %v5631_v29 = vpack.c.bf16 %v7582_v26, %v7581_v16  ;;  %v7584_v42 = vand.u32 4294901760, %v5116_v55  ;;  %v7585_v8 = vand.u32 4294901760, %v5376_v15  ;;  %v7586_v46 = vand.u32 4294901760, %v5385_v62 }
  0x6b   :  { %v5599_v60 = vpack.c.bf16 %v7572_v47, %v7571_v58  ;;  %432 = vmatprep.mubr.f32.mxu0 %v7549_v12  ;;  %v5618_v58 = vpack.c.bf16 %v7578_v25, %v7577_v17  ;;  %v5624_v47 = vpack.c.bf16 %v7580_v33, %v7579_v37  ;;  %4203 = vmatprep.subr.bf16.mxu0 %v4202_v11  ;;  %v7587_v11 = vld [vmem:[#allocation40_spill] sm:$0xff]  ;;  %v7588_v49 = vand.u32 4294901760, %v5129_v2 }
  0x6c   :  { %3782 = vmatmul.mubr.f32.vlgmr.msra.gmra.mrb[0].mxu1 %v5304_v23  ;;  %v5637_v7 = vpack.c.bf16 %v7584_v42, %v7583_v31  ;;  %v5643_v6 = vpack.c.bf16 %v7586_v46, %v7585_v8  ;;  %v7589_v50 = vand.u32 4294901760, %v5138_v13  ;;  %v7590_v54 = vand.u32 4294901760, %v5142_v19 }
  0x6d   :  { %4393 = vmatpush3.bf16.msra.mxu1 %v4390_v0  ;;  %3816 = vmatprep.mubr.f32.mxu1 %v7587_v11  ;;  %v7591_v55 = vand.u32 4294901760, %v5145_v27  ;;  %v7592_v15 = vand.u32 4294901760, %v5412_v61  ;;  %v7593_v62 = vand.u32 4294901760, %v5420_v22  ;;  %v7594_v2 = vand.u32 4294901760, %v5153_v35 }
  0x6e   :  { %v5650_v20 = vpack.c.bf16 %v7589_v50, %v7588_v49  ;;  %4395 = vmatprep.subr.bf16.mxu1 %v4394_v4  ;;  %434 = vmatmul.mubr.f32.gmra.mrb[2].mxu0 %v5304_v23  ;;  %v7595_v13 = vand.u32 4294901760, %v5162_v57  ;;  %v7596_v19 = vand.u32 4294901760, %v5171_v56  ;;  %v7597_v27 = vand.u32 4294901760, %v5173_v44 }
  0x6f   :  { %v5656_v41 = vpack.c.bf16 %v7591_v55, %v7590_v54  ;;  %v5662_v17 = vpack.c.bf16 %v7593_v62, %v7592_v15  ;;  %v7598_v37 = vand.u32 4294901760, %v5446_v5  ;;  %v7599_v33 = vand.u32 4294901760, %v5454_v52  ;;  %4205 = vmatpush1.bf16.msra.mxu0 %v4204_v63  ;;  %568 = vmatprep.mubr.f32.mxu0 %v7549_v12  ;;  %v7607_v15 = vld [vmem:[#allocation27_spill] sm:$0xff] }
  0x70   :  { %v5669_v0 = vpack.c.bf16 %v7595_v13, %v7594_v2  ;;  %v5675_v25 = vpack.c.bf16 %v7597_v27, %v7596_v19  ;;  %v7600_v26 = vand.u32 4294901760, %v5183_v32  ;;  %v7601_v31 = vand.u32 4294901760, %v5185_v10  ;;  %4207 = vmatprep.subr.bf16.mxu0 %v4206_v18  ;;  %v7609_v13 = vld [vmem:[#allocation29_spill] sm:$0xff] }
  0x71   :  { %v5681_v16 = vpack.c.bf16 %v7599_v33, %v7598_v37  ;;  %v7602_v8 = vand.u32 4294901760, %v5194_v38  ;;  %v7603_v46 = vand.u32 4294901760, %v5201_v36  ;;  %v7604_v50 = vand.u32 4294901760, %v5477_v3  ;;  %4397 = vmatpush3.bf16.msra.mxu1 %v4394_v4 }
  0x72   :  { %v5688_v42 = vpack.c.bf16 %v7601_v31, %v7600_v26  ;;  %v7605_v54 = vand.u32 4294901760, %v5489_v59  ;;  %v7606_v63 = vand.u32 4294901760, %v5209_v40  ;;  %v7608_v62 = vand.u32 4294901760, %v7607_v15  ;;  %4399 = vmatprep.subr.bf16.mxu1 %v4398_v48 }
  0x73   :  { %v5694_v49 = vpack.c.bf16 %v7603_v46, %v7602_v8  ;;  %v7610_v19 = vand.u32 4294901760, %v7609_v13  ;;  %v7611_v27 = vand.u32 4294901760, %v7559_v9  ;;  %v7613_v33 = vand.u32 4294901760, %v5511_v1  ;;  %4209 = vmatpush1.bf16.msra.mxu0 %v4208_v43  ;;  %v7642_v43 = vld [vmem:[#allocation21_spill] sm:$0xff] }
  0x74   :  { %v5700_v55 = vpack.c.bf16 %v7605_v54, %v7604_v50  ;;  %v5706_v2 = vpack.c.bf16 %v7608_v62, %v7606_v63  ;;  %v7614_v26 = vand.u32 4294901760, %v5523_v53  ;;  %v7616_v18 = vand.u32 4294901760, %v7564_v51  ;;  %v7620_v62 = vld [vmem:[#allocation30_spill] sm:$0xff]  ;;  %4211 = vmatprep.subr.bf16.mxu0 %v4210_v45  ;;  %v7643_v45 = vld [vmem:[#allocation24_spill] sm:$0xff] }
  0x75   :  { %v5712_v37 = vpack.c.bf16 %v7611_v27, %v7610_v19  ;;  %v7617_v8 = vand.u32 4294901760, %v5246_v21  ;;  %v7618_v50 = vand.u32 4294901760, %v5250_v39  ;;  %v7619_v54 = vand.u32 4294901760, %v5253_v28  ;;  %4401 = vmatpush3.bf16.msra.mxu1 %v4398_v48  ;;  %v7641_v48 = vld [vmem:[#allocation20_spill] sm:$0xff] }
  0x76   :  { %v5718_v31 = vpack.c.bf16 %v7614_v26, %v7613_v33  ;;  %v7621_v19 = vand.u32 4294901760, %v7620_v62  ;;  %v7622_v27 = vand.u32 4294901760, %v5556_v34  ;;  %v7623_v33 = vld [vmem:[#allocation36_spill] sm:$0xff]  ;;  %v4402_v4 = vpack.c.bf16 %v5420_v22, %v5412_v61  ;;  %v7630_v22 = vld [vmem:[#allocation10_spill] sm:$0xff] }
  0x77   :  { %7612 = vst [vmem:[#allocation22_spill] sm:$0xff] %v5712_v37  ;;  %v5724_v46 = vpack.c.bf16 %v7617_v8, %v7616_v18  ;;  %v5730_v63 = vpack.c.bf16 %v7619_v54, %v7618_v50  ;;  %v7624_v26 = vand.u32 4294901760, %v7623_v33  ;;  %v4212_v18 = vpack.c.bf16 %v5162_v57, %v5153_v35  ;;  %v7647_v54 = vld [vmem:[#allocation31_spill] sm:$0xff] }
  0x78   :  { %7615 = vst [vmem:[#allocation23_spill] sm:$0xff] %v5718_v31  ;;  %v5736_v23 = vpack.c.bf16 %v7622_v27, %v7621_v19  ;;  %v7625_v31 = vand.u32 4294901760, %v5280_v30  ;;  %v4214_v8 = vpack.c.bf16 %v5173_v44, %v5171_v56  ;;  %4403 = vmatprep.subr.bf16.mxu1 %v4402_v4  ;;  %v4406_v50 = vpack.c.bf16 %v5454_v52, %v5446_v5  ;;  %v7632_v5 = vld [vmem:[#allocation11_spill] sm:$0xff]  ;;  %v7633_v52 = vld [vmem:[#allocation12_spill] sm:$0xff]  ;;  %v7649_v19 = vld [vmem:[#allocation34_spill] sm:$0xff] }
  0x79   :  { %4213 = vmatpush1.bf16.msra.mxu0 %v4212_v18  ;;  %v4218_v61 = vpack.c.bf16 %v5201_v36, %v5194_v38  ;;  %4405 = vmatpush3.bf16.msra.mxu1 %v4402_v4  ;;  %v4410_v35 = vpack.c.bf16 %v5489_v59, %v5477_v3  ;;  %v4220_v44 = vpack.c.bf16 %v7607_v15, %v5209_v40  ;;  %v7626_v40 = vld [vmem:[#allocation5_spill] sm:$0xff]  ;;  %v7635_v3 = vld [vmem:[#allocation14_spill] sm:$0xff]  ;;  %v7636_v59 = vld [vmem:[#allocation15_spill] sm:$0xff] }
  0x7a   :  { %v5742_v37 = vpack.c.bf16 %v7625_v31, %v7624_v26  ;;  %v4216_v31 = vpack.c.bf16 %v5185_v10, %v5183_v32  ;;  %4215 = vmatprep.subr.bf16.mxu0 %v4214_v8  ;;  %4407 = vmatprep.subr.bf16.mxu1 %v4406_v50  ;;  %v4222_v56 = vpack.c.bf16 %v7559_v9, %v7609_v13  ;;  %v7637_v9 = vld [vmem:[#allocation16_spill] sm:$0xff]  ;;  %v7645_v15 = vld [vmem:[#allocation26_spill] sm:$0xff]  ;;  %v7650_v27 = vld [vmem:[#allocation35_spill] sm:$0xff] }
  0x7b   :  { %v4414_v10 = vpack.c.bf16 %v5523_v53, %v5511_v1  ;;  %v4224_v32 = vpack.c.bf16 %v5246_v21, %v7564_v51  ;;  %v4226_v38 = vpack.c.bf16 %v5253_v28, %v5250_v39  ;;  %v4418_v57 = vpack.c.bf16 %v5556_v34, %v7620_v62  ;;  %v7627_v21 = vld [vmem:[#allocation7_spill] sm:$0xff]  ;;  %v7628_v39 = vld [vmem:[#allocation8_spill] sm:$0xff]  ;;  %v7634_v1 = vld [vmem:[#allocation13_spill] sm:$0xff] }
  0x7c   :  { %v4228_v36 = vpack.c.bf16 %v5280_v30, %v7623_v33  ;;  %v7629_v28 = vld [vmem:[#allocation43_spill] sm:$0xff]  ;;  %v7631_v30 = vld [vmem:[#allocation42_spill] sm:$0xff]  ;;  %v7638_v53 = vld [vmem:[#allocation17_spill] sm:$0xff] }
  0x7d   :  { %4217 = vmatpush1.bf16.msra.mxu0 %v4216_v31  ;;  %4409 = vmatpush3.bf16.msra.mxu1 %v4406_v50  ;;  %v7639_v51 = vld [vmem:[#allocation18_spill] sm:$0xff]  ;;  %v7640_v34 = vld [vmem:[#allocation19_spill] sm:$0xff]  ;;  %v7646_v13 = vld [vmem:[#allocation28_spill] sm:$0xff] }
  0x7e   :  { %4219 = vmatprep.subr.bf16.mxu0 %v4218_v61  ;;  %4411 = vmatprep.subr.bf16.mxu1 %v4410_v35  ;;  %v7648_v62 = vld [vmem:[#allocation33_spill] sm:$0xff]  ;;  %v7651_v33 = vld [vmem:[#allocation39_spill] sm:$0xff]  ;;  %v7652_v26 = vld [vmem:[#allocation44_spill] sm:$0xff] }
  0x7f   :  { %v7653_v4 = vld [vmem:[#allocation37_spill] sm:$0xff] }
  0x81   :  { %4221 = vmatpush1.bf16.msra.mxu0 %v4220_v44  ;;  %4413 = vmatpush3.bf16.msra.mxu1 %v4410_v35 }
  0x82   :  { %4223 = vmatprep.subr.bf16.mxu0 %v4222_v56  ;;  %4415 = vmatprep.subr.bf16.mxu1 %v4414_v10 }
  0x85   :  { %4225 = vmatpush1.bf16.msra.mxu0 %v4224_v32  ;;  %4417 = vmatpush3.bf16.msra.mxu1 %v4414_v10 }
  0x86   :  { %4227 = vmatprep.subr.bf16.mxu0 %v4226_v38  ;;  %4419 = vmatprep.subr.bf16.mxu1 %v4418_v57 }
  0x89   :  { %4229 = vmatpush1.bf16.msra.mxu0 %v4228_v36  ;;  %4421 = vmatpush3.bf16.msra.mxu1 %v4418_v57 }
  0x8a   :  { %4231 = vmatprep.subr.bf16.mxu0 %v7626_v40  ;;  %4423 = vmatprep.subr.bf16.mxu1 %v7627_v21 }
  0x8c   :  { %571 = vmatmul.mubr.f32.vlgmr.msra.gmra.mrb[0].mxu0 %v7587_v11  ;;  %3817 = vmatmul.mubr.f32.vlgmr.msra.gmra.mrb[0].mxu1 %v7629_v28  ;;  %v7644_v11 = vld [vmem:[#allocation25_spill] sm:$0xff] }
  0x8d   :  { %4233 = vmatpush1.bf16.msra.mxu0 %v7628_v39  ;;  %576 = vmatprep.mubr.f32.mxu0 %v7549_v12 }
  0x8e   :  { %4235 = vmatprep.subr.bf16.mxu0 %v7630_v22  ;;  %4425 = vmatpush3.bf16.msra.mxu1 %v7627_v21 }
  0x8f   :  { %3851 = vmatprep.mubr.f32.mxu1 %v7631_v30  ;;  %4427 = vmatprep.subr.bf16.mxu1 %v7632_v5 }
  0x90   :  { %579 = vmatmul.mubr.f32.gmra.mrb[2].mxu0 %v7629_v28 }
  0x91   :  { %4237 = vmatpush1.bf16.msra.mxu0 %v7633_v52  ;;  %681 = vmatprep.mubr.f32.mxu0 %v7549_v12 }
  0x92   :  { %4239 = vmatprep.subr.bf16.mxu0 %v7634_v1  ;;  %4429 = vmatpush3.bf16.msra.mxu1 %v7632_v5 }
  0x93   :  { %4431 = vmatprep.subr.bf16.mxu1 %v7635_v3 }
  0x95   :  { %4241 = vmatpush1.bf16.msra.mxu0 %v7636_v59 }
  0x96   :  { %4243 = vmatprep.subr.bf16.mxu0 %v7637_v9  ;;  %4433 = vmatpush3.bf16.msra.mxu1 %v7635_v3 }
  0x97   :  { %4435 = vmatprep.subr.bf16.mxu1 %v7638_v53 }
  0x99   :  { %4245 = vmatpush1.bf16.msra.mxu0 %v7639_v51 }
  0x9a   :  { %4247 = vmatprep.subr.bf16.mxu0 %v7640_v34  ;;  %4437 = vmatpush3.bf16.msra.mxu1 %v7638_v53 }
  0x9b   :  { %4439 = vmatprep.subr.bf16.mxu1 %v7641_v48 }
  0x9d   :  { %4249 = vmatpush1.bf16.msra.mxu0 %v7642_v43 }
  0x9e   :  { %4251 = vmatprep.subr.bf16.mxu0 %v7643_v45  ;;  %4441 = vmatpush3.bf16.msra.mxu1 %v7641_v48 }
  0x9f   :  { %4443 = vmatprep.subr.bf16.mxu1 %v7644_v11 }
  0xa1   :  { %4253 = vmatpush1.bf16.msra.mxu0 %v7645_v15 }
  0xa2   :  { %4255 = vmatprep.subr.bf16.mxu0 %v7646_v13  ;;  %4445 = vmatpush3.bf16.msra.mxu1 %v7644_v11 }
  0xa3   :  { %4447 = vmatprep.subr.bf16.mxu1 %v7647_v54 }
  0xa5   :  { %4257 = vmatpush1.bf16.msra.mxu0 %v7648_v62 }
  0xa6   :  { %4259 = vmatprep.subr.bf16.mxu0 %v7649_v19  ;;  %4449 = vmatpush3.bf16.msra.mxu1 %v7647_v54 }
  0xa7   :  { %4451 = vmatprep.subr.bf16.mxu1 %v7650_v27 }
  0xa9   :  { %4261 = vmatpush1.bf16.msra.mxu0 %v7651_v33 }
  0xaa   :  { %4263 = vmatprep.subr.bf16.mxu0 %v5599_v60  ;;  %4453 = vmatpush3.bf16.msra.mxu1 %v7650_v27  ;;  %v7655_v60 = vld [vmem:[#allocation23_spill] sm:$0xff] }
  0xab   :  { %4455 = vmatprep.subr.bf16.mxu1 %v5605_v24 }
  0xac   :  { %685 = vmatmul.mubr.f32.vlgmr.msra.gmra.mrb[0].mxu0 %v7631_v30 }
  0xad   :  { %4265 = vmatpush1.bf16.msra.mxu0 %v5612_v14  ;;  %690 = vmatprep.mubr.f32.mxu0 %v7549_v12  ;;  %v7654_v14 = vld [vmem:[#allocation22_spill] sm:$0xff] }
  0xae   :  { %3852 = vmatmul.mubr.f32.vlgmr.msra.gmra.mrb[0].mxu1 %v7652_v26  ;;  %4267 = vmatprep.subr.bf16.mxu0 %v5618_v58 }
  0xaf   :  { %4457 = vmatpush3.bf16.msra.mxu1 %v5605_v24  ;;  %3886 = vmatprep.mubr.f32.mxu1 %v7653_v4  ;;  %v7656_v24 = vld [vmem:[#allocation41_spill] sm:$0xff] }
  0xb0   :  { %4459 = vmatprep.subr.bf16.mxu1 %v5624_v47  ;;  %694 = vmatmul.mubr.f32.gmra.mrb[2].mxu0 %v7652_v26 }
  0xb1   :  { %4269 = vmatpush1.bf16.msra.mxu0 %v5631_v29  ;;  %860 = vmatprep.mubr.f32.mxu0 %v7549_v12 }
  0xb2   :  { %4271 = vmatprep.subr.bf16.mxu0 %v5637_v7 }
  0xb3   :  { %4461 = vmatpush3.bf16.msra.mxu1 %v5624_v47 }
  0xb4   :  { %4463 = vmatprep.subr.bf16.mxu1 %v5643_v6 }
  0xb5   :  { %4273 = vmatpush1.bf16.msra.mxu0 %v5650_v20 }
  0xb6   :  { %4275 = vmatprep.subr.bf16.mxu0 %v5656_v41 }
  0xb7   :  { %4465 = vmatpush3.bf16.msra.mxu1 %v5643_v6 }
  0xb8   :  { %4467 = vmatprep.subr.bf16.mxu1 %v5662_v17 }
  0xb9   :  { %4277 = vmatpush1.bf16.msra.mxu0 %v5669_v0 }
  0xba   :  { %4279 = vmatprep.subr.bf16.mxu0 %v5675_v25  ;;  %v5898_v25 = vld [vmem:[%s7177_s3] sm:$0xff] }
  0xbb   :  { %4469 = vmatpush3.bf16.msra.mxu1 %v5662_v17  ;;  %7658 = vst [vmem:[#allocation6_spill] sm:$0xff] %v5898_v25 }
  0xbc   :  { %4471 = vmatprep.subr.bf16.mxu1 %v5681_v16 }
  0xbd   :  { %4281 = vmatpush1.bf16.msra.mxu0 %v5688_v42 }
  0xbe   :  { %4283 = vmatprep.subr.bf16.mxu0 %v5694_v49 }
  0xbf   :  { %4473 = vmatpush3.bf16.msra.mxu1 %v5681_v16 }
  0xc0   :  { %4475 = vmatprep.subr.bf16.mxu1 %v5700_v55 }
  0xc1   :  { %4285 = vmatpush1.bf16.msra.mxu0 %v5706_v2 }
  0xc2   :  { %4287 = vmatprep.subr.bf16.mxu0 %v7654_v14 }
  0xc3   :  { %4477 = vmatpush3.bf16.msra.mxu1 %v5700_v55 }
  0xc4   :  { %4479 = vmatprep.subr.bf16.mxu1 %v7655_v60 }
  0xc5   :  { %4289 = vmatpush1.bf16.msra.mxu0 %v5724_v46 }
  0xc6   :  { %4291 = vmatprep.subr.bf16.mxu0 %v5730_v63 }
  0xc7   :  { %4481 = vmatpush3.bf16.msra.mxu1 %v7655_v60 }
  0xc8   :  { %4483 = vmatprep.subr.bf16.mxu1 %v5736_v23 }
  0xc9   :  { %4293 = vmatpush1.bf16.msra.mxu0 %v5742_v37 }
  0xca   :  { %4295 = vmatprep.subr.bf16.mxu0 %v7626_v40 }
  0xcb   :  { %4485 = vmatpush3.bf16.msra.mxu1 %v5736_v23  ;;  %v1692_v23 = vlaneseq }
  0xcc   :  { %4487 = vmatprep.subr.bf16.mxu1 %v7627_v21  ;;  %862 = vmatmul.mubr.f32.vlgmr.msra.gmra.mrb[0].mxu0 %v7653_v4 }
  0xcd   :  { %4297 = vmatpush1.bf16.msra.mxu0 %v7628_v39  ;;  %867 = vmatprep.mubr.f32.mxu0 %v7549_v12  ;;  %v5891_v58 = vshrl.u32 %v1692_v23, 7 }
  0xce   :  { %3887 = vmatmul.mubr.f32.vlgmr.msra.gmra.mrb[0].mxu1 %v7656_v24  ;;  %4299 = vmatprep.subr.bf16.mxu0 %v7630_v22 }
  0xcf   :  { %4489 = vmatpush3.bf16.msra.mxu1 %v7627_v21  ;;  %3921 = vmatprep.mubr.f32.mxu1 %v7653_v4  ;;  %7657 = vst [vmem:[#allocation32_spill] sm:$0xff] %v5891_v58  ;;  %v1694_v20 = vsub.s32 0, %v5891_v58 }
  0xd0   :  { %4491 = vmatprep.subr.bf16.mxu1 %v7632_v5  ;;  %869 = vmatmul.mubr.f32.gmra.mrb[2].mxu0 %v7656_v24 }
  0xd1   :  { %4301 = vmatpush1.bf16.msra.mxu0 %v7633_v52  ;;  %971 = vmatprep.mubr.f32.mxu0 %v7549_v12  ;;  %v1695_v46 = vrot.slane %v5898_v25, %v1694_v20 }
  0xd2   :  { %4303 = vmatprep.subr.bf16.mxu0 %v7634_v1 }
  0xd3   :  { %4493 = vmatpush3.bf16.msra.mxu1 %v7632_v5 }
  0xd4   :  { %4495 = vmatprep.subr.bf16.mxu1 %v7635_v3 }
  0xd5   :  { %4305 = vmatpush1.bf16.msra.mxu0 %v7636_v59 }
  0xd6   :  { %4307 = vmatprep.subr.bf16.mxu0 %v7637_v9 }
  0xd7   :  { %4497 = vmatpush3.bf16.msra.mxu1 %v7635_v3 }
  0xd8   :  { %4499 = vmatprep.subr.bf16.mxu1 %v7638_v53 }
  0xd9   :  { %4309 = vmatpush1.bf16.msra.mxu0 %v7639_v51 }
  0xda   :  { %4311 = vmatprep.subr.bf16.mxu0 %v7640_v34 }
  0xdb   :  { %4501 = vmatpush3.bf16.msra.mxu1 %v7638_v53 }
  0xdc   :  { %4503 = vmatprep.subr.bf16.mxu1 %v7641_v48 }
  0xdd   :  { %4313 = vmatpush1.bf16.msra.mxu0 %v7642_v43 }
  0xde   :  { %4315 = vmatprep.subr.bf16.mxu0 %v7643_v45 }
  0xdf   :  { %4505 = vmatpush3.bf16.msra.mxu1 %v7641_v48 }
  0xe0   :  { %4507 = vmatprep.subr.bf16.mxu1 %v7644_v11 }
  0xe1   :  { %4317 = vmatpush1.bf16.msra.mxu0 %v7645_v15  ;;  %v5931_v15 = vld [vmem:[%s7176_s2 + $0x20] sm:$0xff] }
  0xe2   :  { %4319 = vmatprep.subr.bf16.mxu0 %v7646_v13 }
  0xe3   :  { %4509 = vmatpush3.bf16.msra.mxu1 %v7644_v11  ;;  %v5926_v11 = vld [vmem:[%s7176_s2 + $0x8] sm:$0xff] }
  0xe4   :  { %4511 = vmatprep.subr.bf16.mxu1 %v7647_v54  ;;  %v7346_v13 = vand.u32 4294901760, %v5926_v11 }
  0xe5   :  { %4321 = vmatpush1.bf16.msra.mxu0 %v7648_v62  ;;  %v5938_v62 = vld [vmem:[%s7176_s2] sm:$0xff] }
  0xe6   :  { %4323 = vmatprep.subr.bf16.mxu0 %v7649_v19  ;;  %v5943_v19 = vld [vmem:[%s7176_s2 + $0x18] sm:$0xff] }
  0xe7   :  { %4513 = vmatpush3.bf16.msra.mxu1 %v7647_v54  ;;  %v7345_v54 = vand.u32 4294901760, %v5931_v15  ;;  %v7341_v26 = vand.u32 4294901760, %v5943_v19 }
  0xe8   :  { %4515 = vmatprep.subr.bf16.mxu1 %v7650_v27 }
  0xe9   :  { %4325 = vmatpush1.bf16.msra.mxu0 %v7651_v33  ;;  %v7344_v33 = vand.u32 4294901760, %v5938_v62  ;;  %v5962_v60 = vpack.c.bf16 %v7345_v54, %v7346_v13 }
  0xeb   :  { %4517 = vmatpush3.bf16.msra.mxu1 %v7650_v27  ;;  %v5948_v27 = vld [vmem:[%s7176_s2 + $0x10] sm:$0xff]  ;;  %7662 = vst [vmem:[#allocation27_spill] sm:$0xff] %v5962_v60  ;;  %v5969_v23 = vpack.c.bf16 %v7341_v26, %v7344_v33  ;;  %4519 = vmatprep.subr.bf16.mxu0 %v5962_v60 }
  0xec   :  { %973 = vmatmul.mubr.f32.vlgmr.msra.gmra.mrb[0].mxu0 %v7653_v4  ;;  %v5955_v4 = vld [vmem:[%s7176_s2 + $0x28] sm:$0xff]  ;;  %v7322_v14 = vand.u32 4294901760, %v5948_v27 }
  0xed   :  { %978 = vmatprep.mubr.f32.mxu0 %v7549_v12  ;;  %7663 = vst [vmem:[#allocation29_spill] sm:$0xff] %v5969_v23  ;;  %4521 = vmatpush1.bf16.msra.mxu0 %v5969_v23  ;;  %v7682_v23 = vand.u32 4294901760, %v5931_v15 }
  0xee   :  { %3922 = vmatmul.mubr.f32.vlgmr.msra.gmra.mrb[0].mxu1 %v7656_v24 }
  0xf0   :  { %980 = vmatmul.mubr.f32.gmra.mrb[2].mxu0 %v7656_v24  ;;  %v7321_v24 = vand.u32 4294901760, %v5955_v4 }
  0xf1   :  { %1905 = vmatprep.mubr.f32.mxu0 %v7549_v12  ;;  %v7684_v12 = vand.u32 4294901760, %v5938_v62 }
 0x1bf   :  { %v974_v47 = vpop.f32.mrb[0].mxu0 }
 0x1c0   :  { %v1673_v29 = vrot.slane %v974_v47, 7  ;;  %v976_v7 = vpop.f32.mrb[1].mxu0  ;;  %v5974_v47 = vld [vmem:[%s7176_s2 + $0x38] sm:$0xff] }
 0x1c1   :  { %v3923_v6 = vpop.f32.mrb[0].mxu1 }
 0x1c2   :  { %v1685_v41 = vrot.slane %v3923_v6, 1  ;;  %v1678_v17 = vsel %vm1672_vm0, 0.0, %v1673_v29  ;;  %v1660_v0 = vpop.f32.mrb[1].mxu1  ;;  %v7340_v6 = vand.u32 4294901760, %v5974_v47 }
 0x1c3   :  { %v1679_v16 = vadd.f32 %v1678_v17, %v976_v7  ;;  %v1684_v42 = vrot.slane %v1660_v0, 1  ;;  %v981_v49 = vpop.f32.mrb[2].mxu0  ;;  %v5986_v7 = vpack.c.bf16 %v7321_v24, %v7322_v14  ;;  %v5998_v17 = vld [vmem:[%s7176_s2 + $0x48] sm:$0xff]  ;;  %v6003_v0 = vld [vmem:[%s7176_s2 + $0x40] sm:$0xff] }
 0x1c4   :  { %v1674_v55 = vrot.slane %v981_v49, 7  ;;  %v983_v2 = vpop.f32.mrb[3].mxu0  ;;  %v1689_v50 = vsel %vm1683_vm1, %v1685_v41, 0.0  ;;  %v6011_v49 = vld [vmem:[%s7176_s2 + $0x58] sm:$0xff] }
 0x1c5   :  { %v1686_v37 = vsel %vm1683_vm1, %v1684_v42, %v1685_v41  ;;  %7664 = vst [vmem:[#allocation30_spill] sm:$0xff] %v5986_v7  ;;  %v5993_v41 = vld [vmem:[%s7176_s2 + $0x30] sm:$0xff]  ;;  %v7333_v42 = vand.u32 4294901760, %v5998_v17  ;;  %4711 = vmatprep.subr.bf16.mxu1 %v5986_v7 }
 0x1c6   :  { %v1690_v63 = vadd.f32 %v1686_v37, %v1679_v16  ;;  %v1675_v18 = vsel %vm1672_vm0, %v1673_v29, %v1674_v55  ;;  %v5979_v29 = vld [vmem:[%s7176_s2 + $0x50] sm:$0xff]  ;;  %v7334_v16 = vand.u32 4294901760, %v5993_v41  ;;  %v7320_v55 = vand.u32 4294901760, %v6003_v0  ;;  %4713 = vmatpush3.bf16.msra.mxu1 %v5986_v7 }
 0x1c7   :  { %v1680_v8 = vadd.f32 %v1675_v18, %v983_v2  ;;  %v7337_v20 = vand.u32 4294901760, %v5979_v29  ;;  %v7319_v37 = vand.u32 4294901760, %v6011_v49  ;;  %v6037_v18 = vld [vmem:[%s7176_s2 + $0x80] sm:$0xff]  ;;  %v6280_v7 = vsub.f32 %v5931_v15, %v7682_v23 }
 0x1c8   :  { %v5904_v61 = vadd.f32 %v1695_v46, %v1690_v63  ;;  %v6032_v63 = vld [vmem:[%s7176_s2 + $0x68] sm:$0xff]  ;;  %v7689_v23 = vand.u32 4294901760, %v5979_v29 }
 0x1c9   :  { %v1691_v31 = vadd.f32 %v1689_v50, %v1680_v8  ;;  %v6019_v2 = vpack.c.bf16 %v7337_v20, %v7340_v6  ;;  %v6044_v8 = vpack.c.bf16 %v7319_v37, %v7320_v55  ;;  %v7332_v50 = vand.u32 4294901760, %v6032_v63  ;;  %v6153_v37 = vld [vmem:[%s7176_s2 + $0xe0] sm:$0xff] }
 0x1ca   :  { %7659 = vst [vmem:[#allocation38_spill] sm:$0xff] %v5904_v61  ;;  %v1705_v10 = vmul.f32 %v5904_v61, %v5904_v61  ;;  %v7335_v14 = vand.u32 4294901760, %v6153_v37  ;;  %v6225_v6 = vld [vmem:[%s7176_s2 + $0x100] sm:$0xff] }
 0x1cb   :  { %v5906_v35 = vadd.f32 %v1695_v46, %v1691_v31  ;;  %7665 = vst [vmem:[#allocation36_spill] sm:$0xff] %v6019_v2  ;;  %v6027_v46 = vpack.c.bf16 %v7333_v42, %v7334_v16  ;;  %4523 = vmatprep.subr.bf16.mxu0 %v6019_v2  ;;  %7667 = vst [vmem:[#allocation7_spill] sm:$0xff] %v6044_v8  ;;  %v7331_v31 = vand.u32 4294901760, %v6037_v18  ;;  %4715 = vmatprep.subr.bf16.mxu1 %v6044_v8  ;;  %v1792_v42 = vld [vmem:[%s7176_s2 + $0xf8] sm:$0xff]  ;;  %v1795_v16 = vld [vmem:[%s7176_s2 + $0x110] sm:$0xff] }
 0x1cc   :  { %4717 = vmatpush3.bf16.msra.mxu1 %v6044_v8  ;;  %v1853_v20 = vand.u32 4294901760, %v1795_v16  ;;  %v7368_v33 = vand.u32 4294901760, %v6225_v6  ;;  %v7680_v8 = vand.u32 4294901760, %v5926_v11 }
 0x1cd   :  { %7660 = vst [vmem:[#allocation9_spill] sm:$0xff] %v5906_v35  ;;  %v1698_v44 = vadd.f32 %v5906_v35, %v5904_v61  ;;  %v1706_v56 = vmul.f32 %v5906_v35, %v5906_v35  ;;  %7666 = vst [vmem:[#allocation5_spill] sm:$0xff] %v6027_v46  ;;  %4525 = vmatpush1.bf16.msra.mxu0 %v6027_v46  ;;  %v6289_v46 = vsub.f32 %v5938_v62, %v7684_v12 }
 0x1ce   :  { %v6275_v2 = vsub.f32 %v5926_v11, %v7680_v8  ;;  %v7686_v35 = vand.u32 4294901760, %v5943_v19  ;;  %v7688_v8 = vand.u32 4294901760, %v5974_v47  ;;  %v6304_v61 = vsub.f32 %v5979_v29, %v7689_v23 }
 0x1cf   :  { %v1699_v32 = vrot.slane %v1698_v44, 4  ;;  %v1707_v38 = vadd.f32 %v1706_v56, %v1705_v10  ;;  %v6056_v56 = vld [vmem:[%s7176_s2 + $0x78] sm:$0xff]  ;;  %v6061_v10 = vld [vmem:[%s7176_s2 + $0x70] sm:$0xff]  ;;  %7685 = vst [vmem:[#allocation21_spill] sm:$0xff] %v6289_v46  ;;  %v7691_v12 = vand.u32 4294901760, %v5993_v41  ;;  %v7694_v29 = vand.u32 4294901760, %v6037_v18 }
 0x1d0   :  { %7681 = vst [vmem:[#allocation19_spill] sm:$0xff] %v6275_v2  ;;  %v6294_v11 = vsub.f32 %v5943_v19, %v7686_v35  ;;  %v6299_v15 = vsub.f32 %v5974_v47, %v7688_v8  ;;  %7690 = vst [vmem:[#allocation25_spill] sm:$0xff] %v6304_v61  ;;  %v7692_v35 = vand.u32 4294901760, %v5998_v17  ;;  %v7693_v47 = vand.u32 4294901760, %v6032_v63 }
 0x1d1   :  { %v1700_v57 = vadd.f32 %v1699_v32, %v1698_v44  ;;  %v1708_v36 = vrot.slane %v1707_v38, 4  ;;  %v6051_v44 = vld [vmem:[%s7176_s2 + $0x60] sm:$0xff]  ;;  %v6310_v62 = vsub.f32 %v5993_v41, %v7691_v12  ;;  %v6325_v23 = vsub.f32 %v6037_v18, %v7694_v29 }
 0x1d2   :  { %v7330_v32 = vand.u32 4294901760, %v6051_v44  ;;  %7687 = vst [vmem:[#allocation24_spill] sm:$0xff] %v6294_v11  ;;  %v6315_v19 = vsub.f32 %v5998_v17, %v7692_v35  ;;  %v6320_v8 = vsub.f32 %v6032_v63, %v7693_v47  ;;  %v7696_v41 = vand.u32 4294901760, %v6051_v44 }
 0x1d3   :  { %v1701_v40 = vrot.slane %v1700_v57, 2  ;;  %v1709_v21 = vadd.f32 %v1708_v36, %v1707_v38  ;;  %v7329_v38 = vand.u32 4294901760, %v6056_v56  ;;  %v7318_v36 = vand.u32 4294901760, %v6061_v10  ;;  %7695 = vst [vmem:[#allocation26_spill] sm:$0xff] %v6325_v23 }
 0x1d4   :  { %v6331_v12 = vsub.f32 %v6051_v44, %v7696_v41  ;;  %v7698_v17 = vand.u32 4294901760, %v6056_v56 }
 0x1d5   :  { %v1702_v39 = vadd.f32 %v1701_v40, %v1700_v57  ;;  %v1710_v28 = vrot.slane %v1709_v21, 2  ;;  %v6069_v57 = vld [vmem:[%s7176_s2 + $0x88] sm:$0xff]  ;;  %v6077_v40 = vpack.c.bf16 %v7331_v31, %v7332_v50 }
 0x1d6   :  { %7697 = vst [vmem:[#allocation28_spill] sm:$0xff] %v6331_v12  ;;  %v6336_v35 = vsub.f32 %v6056_v56, %v7698_v17 }
 0x1d7   :  { %v1703_v22 = vrot.slane %v1702_v39, 1  ;;  %v1711_v30 = vadd.f32 %v1710_v28, %v1709_v21  ;;  %7668 = vst [vmem:[#allocation8_spill] sm:$0xff] %v6077_v40  ;;  %v7317_v21 = vand.u32 4294901760, %v6069_v57  ;;  %v6090_v28 = vld [vmem:[%s7176_s2 + $0x98] sm:$0xff]  ;;  %4527 = vmatprep.subr.bf16.mxu0 %v6077_v40 }
 0x1d8   :  { %v7699_v63 = vand.u32 4294901760, %v6090_v28 }
 0x1d9   :  { %v1712_v5 = vrot.slane %v1711_v30, 1  ;;  %v1704_v52 = vadd.f32 %v1703_v22, %v1702_v39  ;;  %v6085_v39 = vpack.c.bf16 %v7329_v38, %v7330_v32  ;;  %v6095_v22 = vld [vmem:[%s7176_s2 + $0xb0] sm:$0xff] }
 0x1da   :  { %v6341_v47 = vsub.f32 %v6090_v28, %v7699_v63  ;;  %v7700_v18 = vand.u32 4294901760, %v6095_v22  ;;  %v7704_v63 = vand.u32 4294901760, %v6153_v37 }
 0x1db   :  { %v1713_v1 = vadd.f32 %v1712_v5, %v1711_v30  ;;  %7669 = vst [vmem:[#allocation43_spill] sm:$0xff] %v6085_v39  ;;  %v6102_v30 = vpack.c.bf16 %v7317_v21, %v7318_v36  ;;  %v7328_v5 = vand.u32 4294901760, %v6090_v28  ;;  %4529 = vmatpush1.bf16.msra.mxu0 %v6085_v39  ;;  %v6148_v36 = vld [vmem:[%s7176_s2 + $0xc8] sm:$0xff]  ;;  %v1797_v39 = vld [vmem:[%s7176_s2 + $0x120] sm:$0xff] }
 0x1dc   :  { %v7336_v24 = vand.u32 4294901760, %v6148_v36  ;;  %v1859_v40 = vand.u32 4294901760, %v1797_v39  ;;  %v6346_v29 = vsub.f32 %v6095_v22, %v7700_v18  ;;  %v7703_v17 = vand.u32 4294901760, %v6148_v36 }
 0x1dd   :  { %v1714_v3 = vsel %vm1672_vm0, %v1704_v52, %v1713_v1  ;;  %7670 = vst [vmem:[#allocation10_spill] sm:$0xff] %v6102_v30  ;;  %v7325_v52 = vand.u32 4294901760, %v6095_v22  ;;  %v6109_v1 = vld [vmem:[%s7176_s2 + $0x90] sm:$0xff]  ;;  %4719 = vmatprep.subr.bf16.mxu1 %v6102_v30  ;;  %v6366_v22 = vsub.f32 %v6153_v37, %v7704_v63 }
 0x1de   :  { %1715 = vrot.lane.b32.xlu0 %v1714_v3, %s5006_s8  ;;  %4721 = vmatpush3.bf16.msra.mxu1 %v6102_v30  ;;  %v6193_v32 = vpack.c.bf16 %v7335_v14, %v7336_v24  ;;  %v1849_v24 = vand.u32 4294901760, %v1792_v42  ;;  %v1800_v30 = vld [vmem:[%s7176_s2 + $0x138] sm:$0xff]  ;;  %v7701_v60 = vand.u32 4294901760, %v6109_v1  ;;  %v6361_v28 = vsub.f32 %v6148_v36, %v7703_v17  ;;  %v1807_v37 = vld [vmem:[%s7176_s2 + $0x170] sm:$0xff] }
 0x1df   :  { %v6383_v17 = vsub.f32 %v1795_v16, %v1853_v20  ;;  %v1803_v63 = vld [vmem:[%s7176_s2 + $0x150] sm:$0xff]  ;;  %v6405_v16 = vld [vmem:[%s7176_s2 + $0x160] sm:$0xff] }
 0x1e0   :  { %7674 = vst [vmem:[#allocation13_spill] sm:$0xff] %v6193_v32  ;;  %v6235_v54 = vpack.c.bf16 %v1853_v20, %v1849_v24  ;;  %v6351_v44 = vsub.f32 %v6109_v1, %v7701_v60  ;;  %v1804_v60 = vld [vmem:[%s7176_s2 + $0x158] sm:$0xff]  ;;  %v6381_v36 = vsub.f32 %v1792_v42, %v1849_v24 }
 0x1e1   :  { %v6410_v42 = vld [vmem:[%s7176_s2 + $0x178] sm:$0xff] }
 0x1e2   :  { %7677 = vst [vmem:[#allocation16_spill] sm:$0xff] %v6235_v54 }
 0x250   :  { %v1716_v59 = vpop.permute.xlu0 %1715 }
 0x251   :  { %v1717_v9 = vadd.f32 %v1716_v59, %v1714_v3  ;;  %v6114_v3 = vld [vmem:[%s7176_s2 + $0xa8] sm:$0xff]  ;;  %v6119_v59 = vld [vmem:[%s7176_s2 + $0xa0] sm:$0xff] }
 0x252   :  { %v7702_v41 = vand.u32 4294901760, %v6114_v3 }
 0x253   :  { %1718 = vrot.lane.b32.xlu0 %v1717_v9, %s5007_s9 }
 0x254   :  { %v6356_v56 = vsub.f32 %v6114_v3, %v7702_v41 }
 0x2c5   :  { %v1719_v53 = vpop.permute.xlu0 %1718 }
 0x2c6   :  { %v1720_v51 = vadd.f32 %v1719_v53, %v1717_v9  ;;  %v7324_v9 = vand.u32 4294901760, %v6109_v1  ;;  %v7323_v53 = vand.u32 4294901760, %v6114_v3 }
 0x2c8   :  { %1721 = vrot.lane.b32.xlu1 %v1720_v51, %s5008_s10  ;;  %v6143_v21 = vpack.c.bf16 %v7323_v53, %v7324_v9  ;;  %v6167_v53 = vld [vmem:[%s7176_s2 + $0xc0] sm:$0xff]  ;;  %v6172_v9 = vld [vmem:[%s7176_s2 + $0xd8] sm:$0xff] }
 0x2c9   :  { %v7705_v1 = vand.u32 4294901760, %v6167_v53  ;;  %v7706_v3 = vand.u32 4294901760, %v6172_v9 }
 0x2ca   :  { %7672 = vst [vmem:[#allocation11_spill] sm:$0xff] %v6143_v21 }
 0x2cb   :  { %v6374_v18 = vsub.f32 %v6167_v53, %v7705_v1  ;;  %v6379_v41 = vsub.f32 %v6172_v9, %v7706_v3 }
 0x33a   :  { %v1722_v34 = vpop.permute.xlu1 %1721 }
 0x33b   :  { %v1723_v48 = vadd.f32 %v1722_v34, %v1720_v51  ;;  %v6127_v51 = vld [vmem:[%s7176_s2 + $0xb8] sm:$0xff]  ;;  %v7327_v34 = vand.u32 4294901760, %v6119_v59 }
 0x33d   :  { %1724 = vrot.lane.b32.xlu1 %v1723_v48, %s5009_s11 }
 0x3af   :  { %v1725_v43 = vpop.permute.xlu1 %1724 }
 0x3b0   :  { %v5919_v45 = vadd.f32 %v1725_v43, %v1723_v48  ;;  %v6135_v48 = vpack.c.bf16 %v7325_v52, %v7328_v5  ;;  %v7326_v43 = vand.u32 4294901760, %v6127_v51  ;;  %v6177_v52 = vld [vmem:[%s7176_s2 + $0xd0] sm:$0xff]  ;;  %v6185_v5 = vld [vmem:[%s7176_s2 + $0xe8] sm:$0xff] }
 0x3b1   :  { %v7343_v38 = vand.u32 4294901760, %v6177_v52  ;;  %v7342_v31 = vand.u32 4294901760, %v6185_v5 }
 0x3b2   :  { %7661 = vst [vmem:[#allocation40_spill] sm:$0xff] %v5919_v45  ;;  %1727 = vrot.lane.b32.xlu0 %v5919_v45, %s5010_s12  ;;  %7671 = vst [vmem:[#allocation42_spill] sm:$0xff] %v6135_v48  ;;  %4531 = vmatprep.subr.bf16.mxu0 %v6135_v48  ;;  %v6160_v55 = vpack.c.bf16 %v7326_v43, %v7327_v34  ;;  %v7339_v43 = vand.u32 4294901760, %v6167_v53  ;;  %v7338_v34 = vand.u32 4294901760, %v6172_v9  ;;  %v1806_v53 = vld [vmem:[%s7176_s2 + $0x168] sm:$0xff] }
 0x3b3   :  { %4533 = vmatpush1.bf16.msra.mxu0 %v6143_v21  ;;  %v6214_v14 = vpack.c.bf16 %v7342_v31, %v7343_v38  ;;  %v6231_v38 = vld [vmem:[%s7176_s2 + $0x118] sm:$0xff]  ;;  %v1801_v21 = vld [vmem:[%s7176_s2 + $0x140] sm:$0xff] }
 0x3b4   :  { %7673 = vst [vmem:[#allocation12_spill] sm:$0xff] %v6160_v55  ;;  %4723 = vmatprep.subr.bf16.mxu1 %v6160_v55  ;;  %v6201_v50 = vpack.c.bf16 %v7338_v34, %v7339_v43  ;;  %4535 = vmatprep.subr.bf16.mxu0 %v6193_v32  ;;  %v1791_v34 = vld [vmem:[%s7176_s2 + $0xf0] sm:$0xff]  ;;  %v1794_v43 = vld [vmem:[%s7176_s2 + $0x108] sm:$0xff]  ;;  %v7367_v13 = vand.u32 4294901760, %v6231_v38 }
 0x3b5   :  { %4725 = vmatpush3.bf16.msra.mxu1 %v6160_v55  ;;  %7676 = vst [vmem:[#allocation15_spill] sm:$0xff] %v6214_v14  ;;  %v1851_v26 = vand.u32 4294901760, %v1791_v34  ;;  %v1855_v31 = vand.u32 4294901760, %v1794_v43 }
 0x3b6   :  { %7675 = vst [vmem:[#allocation14_spill] sm:$0xff] %v6201_v50  ;;  %4727 = vmatprep.subr.bf16.mxu1 %v6214_v14  ;;  %v6252_v55 = vpack.c.bf16 %v7367_v13, %v7368_v33  ;;  %v1863_v13 = vand.u32 4294901760, %v1800_v30  ;;  %v6269_v33 = vld [vmem:[%s7176_s2 + $0x148] sm:$0xff] }
 0x3b7   :  { %4537 = vmatpush1.bf16.msra.mxu0 %v6201_v50  ;;  %v6239_v32 = vpack.c.bf16 %v1855_v31, %v1851_v26  ;;  %v1798_v50 = vld [vmem:[%s7176_s2 + $0x128] sm:$0xff]  ;;  %v6394_v1 = vsub.f32 %v1791_v34, %v1851_v26  ;;  %v6396_v9 = vsub.f32 %v1794_v43, %v1855_v31  ;;  %v6414_v26 = vsub.f32 %v1797_v39, %v1859_v40 }
 0x3b8   :  { %4539 = vmatprep.subr.bf16.mxu0 %v6235_v54  ;;  %7679 = vst [vmem:[#allocation18_spill] sm:$0xff] %v6252_v55  ;;  %v1857_v48 = vand.u32 4294901760, %v1798_v50  ;;  %v6263_v54 = vld [vmem:[%s7176_s2 + $0x130] sm:$0xff]  ;;  %v6412_v3 = vpack.c.bf16 %v1863_v13, %v1859_v40  ;;  %v6416_v31 = vsub.f32 %v1800_v30, %v1863_v13  ;;  %v1865_v34 = vand.u32 4294901760, %v1804_v60 }
 0x3b9   :  { %4729 = vmatpush3.bf16.msra.mxu1 %v6214_v14  ;;  %7678 = vst [vmem:[#allocation17_spill] sm:$0xff] %v6239_v32  ;;  %v1861_v14 = vand.u32 4294901760, %v1801_v21  ;;  %v1867_v43 = vand.u32 4294901760, %v1803_v63  ;;  %v7398_v40 = vand.u32 4294901760, %v6410_v42  ;;  %v7717_v39 = vand.u32 4294901760, %v6275_v2 }
 0x3ba   :  { %4731 = vmatprep.subr.bf16.mxu1 %v6252_v55  ;;  %v6398_v24 = vsub.f32 %v1798_v50, %v1857_v48  ;;  %7707 = vst [vmem:[#allocation31_spill] sm:$0xff] %v6412_v3  ;;  %v7708_v50 = vand.u32 4294901760, %v6263_v54 }
 0x3bb   :  { %4541 = vmatpush1.bf16.msra.mxu0 %v6239_v32  ;;  %v6283_v32 = vpack.c.bf16 %v1861_v14, %v1857_v48  ;;  %v6400_v20 = vsub.f32 %v1801_v21, %v1861_v14  ;;  %v7709_v14 = vand.u32 4294901760, %v6269_v33  ;;  %v1869_v48 = vand.u32 4294901760, %v1807_v37 }
 0x3bd   :  { %7683 = vst [vmem:[#allocation20_spill] sm:$0xff] %v6283_v32  ;;  %4733 = vmatpush3.bf16.msra.mxu1 %v6252_v55  ;;  %4543 = vmatprep.subr.bf16.mxu0 %v6283_v32  ;;  %v6422_v21 = vpack.c.bf16 %v7709_v14, %v7708_v50  ;;  %v1871_v32 = vand.u32 4294901760, %v1806_v53  ;;  %v7399_v55 = vand.u32 4294901760, %v6405_v16  ;;  %v6431_v30 = vpack.c.bf16 %v1869_v48, %v1865_v34 }
 0x3be   :  { %v6433_v50 = vsub.f32 %v1804_v60, %v1865_v34  ;;  %v6435_v14 = vsub.f32 %v1807_v37, %v1869_v48  ;;  %v7718_v60 = vand.u32 4294901760, %v6280_v7 }
 0x3bf   :  { %7710 = vst [vmem:[#allocation33_spill] sm:$0xff] %v6422_v21  ;;  %4545 = vmatpush1.bf16.msra.mxu0 %v6412_v3  ;;  %4735 = vmatprep.subr.bf16.mxu1 %v6422_v21  ;;  %7711 = vst [vmem:[#allocation34_spill] sm:$0xff] %v6431_v30  ;;  %v6437_v58 = vpack.c.bf16 %v1871_v32, %v1867_v43  ;;  %v6439_v3 = vsub.f32 %v1803_v63, %v1867_v43  ;;  %v7404_v63 = vand.u32 4294901760, %v6289_v46 }
 0x3c0   :  { %7712 = vst [vmem:[#allocation35_spill] sm:$0xff] %v6433_v50  ;;  %v6441_v25 = vsub.f32 %v1806_v53, %v1871_v32  ;;  %v6447_v13 = vpack.c.bf16 %v7398_v40, %v7399_v55  ;;  %4547 = vmatprep.subr.bf16.mxu0 %v6431_v30  ;;  %v1943_v37 = vsub.f32 %v6280_v7, %v7718_v60  ;;  %v7407_v32 = vand.u32 4294901760, %v6294_v11 }
 0x3c1   :  { %4737 = vmatpush3.bf16.msra.mxu1 %v6422_v21  ;;  %7713 = vst [vmem:[#allocation39_spill] sm:$0xff] %v6437_v58  ;;  %7714 = vst [vmem:[#allocation44_spill] sm:$0xff] %v6439_v3  ;;  %v1931_v21 = vsub.f32 %v6275_v2, %v7717_v39  ;;  %v7719_v53 = vand.u32 4294901760, %v5948_v27  ;;  %v7721_v43 = vand.u32 4294901760, %v5955_v4  ;;  %v7413_v60 = vand.u32 4294901760, %v6299_v15 }
 0x3c2   :  { %7715 = vst [vmem:[#allocation37_spill] sm:$0xff] %v6441_v25  ;;  %7716 = vst [vmem:[#allocation22_spill] sm:$0xff] %v6447_v13  ;;  %4739 = vmatprep.subr.bf16.mxu1 %v6447_v13  ;;  %v7414_v40 = vand.u32 4294901760, %v6304_v61  ;;  %v1944_v55 = vand.u32 4294901760, %v1943_v37 }
 0x3c3   :  { %v6461_v34 = vsub.f32 %v5948_v27, %v7719_v53  ;;  %4549 = vmatpush1.bf16.msra.mxu0 %v6437_v58  ;;  %v1932_v48 = vand.u32 4294901760, %v1931_v21  ;;  %v6468_v39 = vsub.f32 %v5955_v4, %v7721_v43  ;;  %v1937_v27 = vsub.f32 %v6289_v46, %v7404_v63 }
 0x3c4   :  { %v1949_v21 = vsub.f32 %v6294_v11, %v7407_v32  ;;  %v1955_v43 = vsub.f32 %v6299_v15, %v7413_v60  ;;  %v1967_v37 = vsub.f32 %v6304_v61, %v7414_v40  ;;  %v7422_v58 = vand.u32 4294901760, %v6310_v62 }
 0x3c5   :  { %7720 = vst [vmem:[#allocation23_spill] sm:$0xff] %v6461_v34  ;;  %7722 = vst [vmem:[#allocation41_spill] sm:$0xff] %v6468_v39  ;;  %4741 = vmatpush3.bf16.msra.mxu1 %v6447_v13  ;;  %v7415_v53 = vand.u32 4294901760, %v6461_v34  ;;  %v7418_v4 = vand.u32 4294901760, %v6468_v39  ;;  %v4550_v13 = vpack.c.bf16 %v1944_v55, %v1932_v48  ;;  %v1938_v63 = vand.u32 4294901760, %v1937_v27 }
 0x3c6   :  { %v1950_v30 = vand.u32 4294901760, %v1949_v21  ;;  %v1956_v11 = vand.u32 4294901760, %v1955_v43  ;;  %v1968_v46 = vand.u32 4294901760, %v1967_v37  ;;  %v1961_v60 = vsub.f32 %v6310_v62, %v7422_v58 }
 0x3c7   :  { %v2818_v32 = vsub.f32 %v6461_v34, %v7415_v53  ;;  %v2825_v45 = vsub.f32 %v6468_v39, %v7418_v4  ;;  %4551 = vmatprep.subr.bf16.mxu0 %v4550_v13  ;;  %v7420_v48 = vand.u32 4294901760, %v6315_v19  ;;  %v7724_v27 = vand.u32 4294901760, %v6003_v0 }
 0x3c8   :  { %v6497_v40 = vpack.c.bf16 %v1950_v30, %v1938_v63  ;;  %v6505_v61 = vpack.c.bf16 %v1968_v46, %v1956_v11  ;;  %v1962_v43 = vand.u32 4294901760, %v1961_v60  ;;  %v7727_v37 = vand.u32 4294901760, %v6011_v49 }
 0x3c9   :  { %v2819_v55 = vand.u32 4294901760, %v2818_v32  ;;  %v6503_v21 = vsub.f32 %v6003_v0, %v7724_v27  ;;  %v2826_v53 = vand.u32 4294901760, %v2825_v45  ;;  %v1973_v13 = vsub.f32 %v6315_v19, %v7420_v48 }
 0x3ca   :  { %7723 = vst [vmem:[#allocation45_spill] sm:$0xff] %v6497_v40  ;;  %7726 = vst [vmem:[#allocation47_spill] sm:$0xff] %v6505_v61  ;;  %v6510_v4 = vsub.f32 %v6011_v49, %v7727_v37  ;;  %v7419_v63 = vand.u32 4294901760, %v6320_v8  ;;  %v7421_v0 = vand.u32 4294901760, %v6325_v23  ;;  %v7428_v46 = vand.u32 4294901760, %v6331_v12 }
 0x3cb   :  { %7725 = vst [vmem:[#allocation46_spill] sm:$0xff] %v6503_v21  ;;  %v7423_v30 = vand.u32 4294901760, %v6503_v21  ;;  %v6518_v32 = vpack.c.bf16 %v2826_v53, %v2819_v55  ;;  %v7431_v11 = vand.u32 4294901760, %v6336_v35  ;;  %v1974_v49 = vand.u32 4294901760, %v1973_v13 }
 0x3cc   :  { %7728 = vst [vmem:[#allocation48_spill] sm:$0xff] %v6510_v4  ;;  %v7425_v45 = vand.u32 4294901760, %v6510_v4  ;;  %v1979_v27 = vsub.f32 %v6320_v8, %v7419_v63  ;;  %v1991_v53 = vsub.f32 %v6325_v23, %v7421_v0  ;;  %v1985_v37 = vsub.f32 %v6331_v12, %v7428_v46 }
 0x3cd   :  { %7729 = vst [vmem:[#allocation49_spill] sm:$0xff] %v6518_v32  ;;  %v2832_v60 = vsub.f32 %v6503_v21, %v7423_v30  ;;  %4743 = vmatprep.subr.bf16.mxu1 %v6518_v32  ;;  %v1997_v13 = vsub.f32 %v6336_v35, %v7431_v11  ;;  %v7730_v63 = vand.u32 4294901760, %v6061_v10  ;;  %v6547_v0 = vpack.c.bf16 %v1974_v49, %v1962_v43 }
 0x3ce   :  { %v2839_v55 = vsub.f32 %v6510_v4, %v7425_v45  ;;  %v1980_v30 = vand.u32 4294901760, %v1979_v27  ;;  %v1992_v61 = vand.u32 4294901760, %v1991_v53  ;;  %v1986_v45 = vand.u32 4294901760, %v1985_v37 }
 0x3cf   :  { %v6545_v48 = vsub.f32 %v6061_v10, %v7730_v63  ;;  %v2833_v58 = vand.u32 4294901760, %v2832_v60  ;;  %v1998_v40 = vand.u32 4294901760, %v1997_v13  ;;  %v7732_v12 = vand.u32 4294901760, %v6069_v57 }
 0x3d0   :  { %v2840_v32 = vand.u32 4294901760, %v2839_v55  ;;  %v6550_v46 = vpack.c.bf16 %v1992_v61, %v1980_v30  ;;  %v7434_v10 = vand.u32 4294901760, %v6341_v47  ;;  %v7433_v43 = vand.u32 4294901760, %v6346_v29 }
 0x3d1   :  { %7731 = vst [vmem:[#allocation50_spill] sm:$0xff] %v6545_v48  ;;  %v7435_v23 = vand.u32 4294901760, %v6545_v48  ;;  %v6555_v11 = vsub.f32 %v6069_v57, %v7732_v12  ;;  %v6561_v49 = vpack.c.bf16 %v1998_v40, %v1986_v45  ;;  %v7432_v61 = vand.u32 4294901760, %v6351_v44 }
 0x3d2   :  { %v6559_v63 = vpack.c.bf16 %v2840_v32, %v2833_v58  ;;  %v2003_v57 = vsub.f32 %v6341_v47, %v7434_v10  ;;  %v2015_v12 = vsub.f32 %v6346_v29, %v7433_v43  ;;  %v7436_v58 = vand.u32 4294901760, %v6356_v56 }
 0x3d3   :  { %7733 = vst [vmem:[#allocation51_spill] sm:$0xff] %v6555_v11  ;;  %7734 = vst [vmem:[#allocation52_spill] sm:$0xff] %v6561_v49  ;;  %v2846_v60 = vsub.f32 %v6545_v48, %v7435_v23  ;;  %v7438_v30 = vand.u32 4294901760, %v6555_v11  ;;  %v2009_v32 = vsub.f32 %v6351_v44, %v7432_v61  ;;  %v7735_v45 = vand.u32 4294901760, %v6119_v59 }
 0x3d4   :  { %v7737_v53 = vand.u32 4294901760, %v6127_v51  ;;  %v2004_v13 = vand.u32 4294901760, %v2003_v57  ;;  %v2021_v61 = vsub.f32 %v6356_v56, %v7436_v58  ;;  %v7442_v49 = vand.u32 4294901760, %v6366_v22 }
 0x3d5   :  { %v2847_v40 = vand.u32 4294901760, %v2846_v60  ;;  %v6581_v27 = vsub.f32 %v6119_v59, %v7735_v45  ;;  %v2853_v37 = vsub.f32 %v6555_v11, %v7438_v30  ;;  %v2016_v60 = vand.u32 4294901760, %v2015_v12 }
 0x3d6   :  { %v6586_v55 = vsub.f32 %v6127_v51, %v7737_v53  ;;  %v2010_v43 = vand.u32 4294901760, %v2009_v32  ;;  %v7440_v45 = vand.u32 4294901760, %v6361_v28  ;;  %v2022_v53 = vand.u32 4294901760, %v2021_v61 }
 0x3d7   :  { %7736 = vst [vmem:[#allocation53_spill] sm:$0xff] %v6581_v27  ;;  %v7437_v10 = vand.u32 4294901760, %v6581_v27  ;;  %v2854_v23 = vand.u32 4294901760, %v2853_v37  ;;  %v6597_v51 = vpack.c.bf16 %v2016_v60, %v2004_v13  ;;  %v7441_v58 = vand.u32 4294901760, %v6374_v18 }
 0x3d8   :  { %7738 = vst [vmem:[#allocation54_spill] sm:$0xff] %v6586_v55  ;;  %v7439_v59 = vand.u32 4294901760, %v6586_v55  ;;  %v2027_v32 = vsub.f32 %v6361_v28, %v7440_v45  ;;  %v6612_v13 = vpack.c.bf16 %v2022_v53, %v2010_v43  ;;  %v2039_v61 = vsub.f32 %v6366_v22, %v7442_v49 }
 0x3d9   :  { %7739 = vst [vmem:[#allocation55_spill] sm:$0xff] %v6597_v51  ;;  %v2860_v57 = vsub.f32 %v6581_v27, %v7437_v10  ;;  %v6610_v37 = vpack.c.bf16 %v2854_v23, %v2847_v40  ;;  %v7443_v60 = vand.u32 4294901760, %v6379_v41  ;;  %v7742_v43 = vand.u32 4294901760, %v6177_v52 }
 0x3da   :  { %v2867_v12 = vsub.f32 %v6586_v55, %v7439_v59  ;;  %7741 = vst [vmem:[#allocation57_spill] sm:$0xff] %v6612_v13  ;;  %v2028_v51 = vand.u32 4294901760, %v2027_v32  ;;  %v2033_v59 = vsub.f32 %v6374_v18, %v7441_v58  ;;  %v2040_v45 = vand.u32 4294901760, %v2039_v61 }
 0x3db   :  { %7740 = vst [vmem:[#allocation56_spill] sm:$0xff] %v6610_v37  ;;  %v2861_v10 = vand.u32 4294901760, %v2860_v57  ;;  %v2045_v23 = vsub.f32 %v6379_v41, %v7443_v60  ;;  %v6627_v40 = vsub.f32 %v6177_v52, %v7742_v43  ;;  %v7744_v53 = vand.u32 4294901760, %v6185_v5 }
 0x3dc   :  { %v2868_v30 = vand.u32 4294901760, %v2867_v12  ;;  %v2034_v32 = vand.u32 4294901760, %v2033_v59  ;;  %v7445_v58 = vand.u32 4294901760, %v6381_v36  ;;  %v7444_v61 = vand.u32 4294901760, %v6383_v17 }
 0x3dd   :  { %7743 = vst [vmem:[#allocation58_spill] sm:$0xff] %v6627_v40  ;;  %v6632_v57 = vsub.f32 %v6185_v5, %v7744_v53  ;;  %v6638_v49 = vpack.c.bf16 %v2040_v45, %v2028_v51  ;;  %v2046_v60 = vand.u32 4294901760, %v2045_v23  ;;  %v7446_v13 = vand.u32 4294901760, %v6627_v40 }
 0x3de   :  { %v6634_v12 = vpack.c.bf16 %v2868_v30, %v2861_v10  ;;  %v2051_v43 = vsub.f32 %v6381_v36, %v7445_v58  ;;  %v2063_v5 = vsub.f32 %v6383_v17, %v7444_v61  ;;  %v7449_v10 = vand.u32 4294901760, %v6394_v1 }
 0x3df   :  { %7745 = vst [vmem:[#allocation59_spill] sm:$0xff] %v6632_v57  ;;  %7747 = vst [vmem:[#allocation61_spill] sm:$0xff] %v6638_v49  ;;  %v7447_v52 = vand.u32 4294901760, %v6632_v57  ;;  %v7450_v30 = vand.u32 4294901760, %v6396_v9  ;;  %v6650_v59 = vpack.c.bf16 %v2046_v60, %v2034_v32  ;;  %v2874_v45 = vsub.f32 %v6627_v40, %v7446_v13 }
 0x3e0   :  { %7746 = vst [vmem:[#allocation60_spill] sm:$0xff] %v6634_v12  ;;  %v7749_v23 = vand.u32 4294901760, %v6225_v6  ;;  %v2052_v61 = vand.u32 4294901760, %v2051_v43  ;;  %v2064_v58 = vand.u32 4294901760, %v2063_v5  ;;  %v2057_v60 = vsub.f32 %v6394_v1, %v7449_v10 }
 0x3e1   :  { %7748 = vst [vmem:[#allocation62_spill] sm:$0xff] %v6650_v59  ;;  %v2881_v51 = vsub.f32 %v6632_v57, %v7447_v52  ;;  %v2069_v32 = vsub.f32 %v6396_v9, %v7450_v30  ;;  %v2875_v13 = vand.u32 4294901760, %v2874_v45  ;;  %v7751_v52 = vand.u32 4294901760, %v6231_v38 }
 0x3e2   :  { %v6661_v53 = vsub.f32 %v6225_v6, %v7749_v23  ;;  %v6675_v6 = vpack.c.bf16 %v2064_v58, %v2052_v61  ;;  %v2058_v43 = vand.u32 4294901760, %v2057_v60  ;;  %v7452_v23 = vand.u32 4294901760, %v6398_v24 }
 0x3e3   :  { %v2882_v59 = vand.u32 4294901760, %v2881_v51  ;;  %v6673_v12 = vsub.f32 %v6231_v38, %v7751_v52  ;;  %v2070_v5 = vand.u32 4294901760, %v2069_v32  ;;  %v7454_v30 = vand.u32 4294901760, %v6400_v20 }
 0x3e4   :  { %7750 = vst [vmem:[#allocation63_spill] sm:$0xff] %v6661_v53  ;;  %v7455_v49 = vand.u32 4294901760, %v6661_v53  ;;  %7753 = vst [vmem:[#allocation65_spill] sm:$0xff] %v6675_v6  ;;  %v2075_v38 = vsub.f32 %v6398_v24, %v7452_v23  ;;  %v7456_v58 = vand.u32 4294901760, %v6414_v26  ;;  %v7458_v61 = vand.u32 4294901760, %v6416_v31 }
 0x3e5   :  { %7752 = vst [vmem:[#allocation64_spill] sm:$0xff] %v6673_v12  ;;  %v6678_v10 = vpack.c.bf16 %v2882_v59, %v2875_v13  ;;  %v7453_v51 = vand.u32 4294901760, %v6673_v12  ;;  %v6685_v37 = vpack.c.bf16 %v2070_v5, %v2058_v43  ;;  %v2087_v59 = vsub.f32 %v6400_v20, %v7454_v30 }
 0x3e6   :  { %v2888_v45 = vsub.f32 %v6661_v53, %v7455_v49  ;;  %v7756_v60 = vand.u32 4294901760, %v6263_v54  ;;  %v2076_v43 = vand.u32 4294901760, %v2075_v38  ;;  %v2081_v5 = vsub.f32 %v6414_v26, %v7456_v58 }
 0x3e7   :  { %7754 = vst [vmem:[#allocation66_spill] sm:$0xff] %v6678_v10  ;;  %7755 = vst [vmem:[#allocation67_spill] sm:$0xff] %v6685_v37  ;;  %v2895_v52 = vsub.f32 %v6673_v12, %v7453_v51  ;;  %v7758_v23 = vand.u32 4294901760, %v6269_v33  ;;  %v2088_v49 = vand.u32 4294901760, %v2087_v59  ;;  %v7462_v58 = vand.u32 4294901760, %v6435_v14 }
 0x3e8   :  { %v2889_v13 = vand.u32 4294901760, %v2888_v45  ;;  %v6701_v32 = vsub.f32 %v6263_v54, %v7756_v60  ;;  %v2093_v45 = vsub.f32 %v6416_v31, %v7458_v61  ;;  %v7459_v54 = vand.u32 4294901760, %v6433_v50 }
 0x3e9   :  { %v6712_v51 = vsub.f32 %v6269_v33, %v7758_v23  ;;  %v2896_v30 = vand.u32 4294901760, %v2895_v52  ;;  %v2082_v38 = vand.u32 4294901760, %v2081_v5  ;;  %v6720_v61 = vpack.c.bf16 %v2088_v49, %v2076_v43 }
 0x3ea   :  { %7757 = vst [vmem:[#allocation68_spill] sm:$0xff] %v6701_v32  ;;  %v7461_v37 = vand.u32 4294901760, %v6701_v32  ;;  %v2094_v60 = vand.u32 4294901760, %v2093_v45  ;;  %v2099_v23 = vsub.f32 %v6433_v50, %v7459_v54  ;;  %v7463_v49 = vand.u32 4294901760, %v6439_v3 }
 0x3eb   :  { %7759 = vst [vmem:[#allocation69_spill] sm:$0xff] %v6712_v51  ;;  %v7460_v6 = vand.u32 4294901760, %v6712_v51  ;;  %v6718_v10 = vpack.c.bf16 %v2896_v30, %v2889_v13  ;;  %7761 = vst [vmem:[#allocation71_spill] sm:$0xff] %v6720_v61  ;;  %v2111_v30 = vsub.f32 %v6435_v14, %v7462_v58  ;;  %v7464_v5 = vand.u32 4294901760, %v6441_v25 }
 0x3ec   :  { %v2902_v33 = vsub.f32 %v6701_v32, %v7461_v37  ;;  %v6728_v52 = vpack.c.bf16 %v2094_v60, %v2082_v38  ;;  %v2100_v43 = vand.u32 4294901760, %v2099_v23  ;;  %v7763_v45 = vand.u32 4294901760, %v6405_v16 }
 0x3ed   :  { %7760 = vst [vmem:[#allocation70_spill] sm:$0xff] %v6718_v10  ;;  %v2909_v59 = vsub.f32 %v6712_v51, %v7460_v6  ;;  %v2112_v60 = vand.u32 4294901760, %v2111_v30  ;;  %v2105_v6 = vsub.f32 %v6439_v3, %v7463_v49  ;;  %v7765_v37 = vand.u32 4294901760, %v6410_v42  ;;  %v7768_v30 = vld [vmem:[#allocation24_spill] sm:$0xff] }
 0x3ee   :  { %7762 = vst [vmem:[#allocation72_spill] sm:$0xff] %v6728_v52  ;;  %v2903_v13 = vand.u32 4294901760, %v2902_v33  ;;  %v6741_v54 = vsub.f32 %v6405_v16, %v7763_v45  ;;  %v2117_v33 = vsub.f32 %v6441_v25, %v7464_v5  ;;  %v6769_v10 = vpack.c.bf16 %v6468_v39, %v6461_v34  ;;  %v7769_v16 = vld [vmem:[#allocation25_spill] sm:$0xff]  ;;  %v7771_v45 = vld [vmem:[#allocation28_spill] sm:$0xff] }
 0x3ef   :  { %v2910_v38 = vand.u32 4294901760, %v2909_v59  ;;  %v6749_v58 = vsub.f32 %v6410_v42, %v7765_v37  ;;  %v7767_v59 = vld [vmem:[#allocation21_spill] sm:$0xff]  ;;  %v6761_v49 = vpack.c.bf16 %v2112_v60, %v2100_v43  ;;  %v2106_v61 = vand.u32 4294901760, %v2105_v6 }
 0x3f0   :  { %7764 = vst [vmem:[#allocation73_spill] sm:$0xff] %v6741_v54  ;;  %v7468_v23 = vand.u32 4294901760, %v6741_v54  ;;  %v2118_v37 = vand.u32 4294901760, %v2117_v33  ;;  %v6780_v43 = vpack.c.bf16 %v6510_v4, %v6503_v21  ;;  %v6790_v39 = vpack.c.bf16 %v6555_v11, %v6545_v48 }
 0x3f1   :  { %7766 = vst [vmem:[#allocation74_spill] sm:$0xff] %v6749_v58  ;;  %v6759_v52 = vpack.c.bf16 %v2910_v38, %v2903_v13  ;;  %v7470_v42 = vand.u32 4294901760, %v6749_v58  ;;  %v7770_v38 = vld [vmem:[#allocation26_spill] sm:$0xff]  ;;  %v6798_v60 = vpack.c.bf16 %v6586_v55, %v6581_v27  ;;  %v6816_v2 = vpack.c.bf16 %v6673_v12, %v6661_v53  ;;  %v7773_v12 = vld [vmem:[#allocation40_spill] sm:$0xff] }
 0x3f2   :  { %v2916_v5 = vsub.f32 %v6741_v54, %v7468_v23  ;;  %v6784_v33 = vpack.c.bf16 %v2118_v37, %v2106_v61  ;;  %v6806_v37 = vpack.c.bf16 %v6632_v57, %v6627_v40  ;;  %v6824_v57 = vpack.c.bf16 %v6712_v51, %v6701_v32  ;;  %v7774_v32 = vld [vmem:[#allocation6_spill] sm:$0xff] }
 0x3f3   :  { %v2923_v13 = vsub.f32 %v6749_v58, %v7470_v42  ;;  %v6832_v4 = vpack.c.bf16 %v6749_v58, %v6741_v54 }
 0x3f4   :  { %v2917_v23 = vand.u32 4294901760, %v2916_v5 }
 0x3f5   :  { %v2924_v42 = vand.u32 4294901760, %v2923_v13  ;;  %7772 = vst [vmem:[#allocation21_spill] sm:$0xff] %v6832_v4 }
 0x3f7   :  { %v6810_v6 = vpack.c.bf16 %v2924_v42, %v2917_v23  ;;  %v7775_v23 = vld [vmem:[#allocation32_spill] sm:$0xff] }
 0x3f8   :  { %v1749_v48 = vsub.s32 1, %v7775_v23  ;;  %v1755_v34 = vsub.s32 2, %v7775_v23  ;;  %v7841_v23 = vld [vmem:[#allocation23_spill] sm:$0xff] }
 0x424   :  { %v1728_v13 = vpop.permute.xlu0 %1727 }
 0x425   :  { %v1729_v61 = vadd.f32 %v1728_v13, %v7773_v12  ;;  %v7776_v12 = vld [vmem:[#allocation38_spill] sm:$0xff]  ;;  %v7777_v13 = vld [vmem:[#allocation9_spill] sm:$0xff] }
 0x427   :  { %v1730_v53 = vmul.f32 0.001953125, %v1729_v61 }
 0x429   :  { %v1731_v40 = vmul.f32 %v1730_v53, %v1730_v53 }
 0x42b   :  { %v1733_v5 = vrot.slane %v1731_v40, 7 }
 0x42d   :  { %v1735_v55 = vsub.f32 %v1730_v53, %v1733_v5 }
 0x42f   :  { %v1736_v27 = vadd.f32 1e-05, %v1735_v55 }
 0x431   :  { %4971 = vrsqrt.f32 %v1736_v27 }
 0x43b   :  { %v4972_v51 = vpop.eup %4971 }
 0x43c   :  { %v1738_v11 = vmul.f32 %v4972_v51, %v7774_v32 }
 0x43e   :  { %v1740_v21 = vrot.slane %v1738_v11, 1  ;;  %v1750_v54 = vrot.slane %v1738_v11, %v1749_v48 }
 0x440   :  { %v1742_v42 = vmul.f32 %v1740_v21, %v1730_v53  ;;  %v1751_v61 = vmul.f32 %v1750_v54, %v7776_v12  ;;  %v1752_v40 = vmul.f32 %v1750_v54, %v7777_v13  ;;  %v7780_v54 = vmov 0.0   ;;  %v7782_v12 = vld [vmem:[#allocation56_spill] sm:$0xff]  ;;  %v7784_v13 = vld [vmem:[#allocation55_spill] sm:$0xff] }
 0x442   :  { %v1744_v58 = vrot.slane %v1742_v42, 6  ;;  %v7781_v42 = vld [vmem:[#allocation47_spill] sm:$0xff] }
 0x444   :  { %v1746_v3 = vsub.f32 %v7774_v32, %v1744_v58 }
 0x446   :  { %v1756_v5 = vrot.slane %v1746_v3, %v1755_v34 }
 0x448   :  { %v1757_v55 = vadd.f32 %v1756_v5, %v1751_v61  ;;  %v1758_v27 = vadd.f32 %v1756_v5, %v1752_v40  ;;  %v7783_v61 = vld [vmem:[#allocation52_spill] sm:$0xff]  ;;  %v7786_v5 = vld [vmem:[#allocation57_spill] sm:$0xff] }
 0x449   :  { %v7785_v40 = vld [vmem:[#allocation60_spill] sm:$0xff] }
 0x44a   :  { %v1759_v25 = vmax.f32 %v1757_v55, 0.0  ;;  %v1760_v4 = vmax.f32 %v1758_v27, 0.0  ;;  %v7788_v55 = vld [vmem:[#allocation66_spill] sm:$0xff] }
 0x44b   :  { %v7791_v27 = vld [vmem:[#allocation70_spill] sm:$0xff] }
 0x44c   :  { %v6841_v51 = vand.u32 4294901760, %v1759_v25  ;;  %v6843_v50 = vand.u32 4294901760, %v1760_v4 }
 0x44e   :  { %v6846_v21 = vsub.f32 %v1759_v25, %v6841_v51  ;;  %v6849_v48 = vsub.f32 %v1760_v4, %v6843_v50  ;;  %v7778_v25 = vld [vmem:[#allocation45_spill] sm:$0xff] }
 0x44f   :  { %v7779_v4 = vld [vmem:[#allocation49_spill] sm:$0xff] }
 0x450   :  { %v6852_v11 = vand.u32 4294901760, %v6846_v21  ;;  %v6855_v53 = vand.u32 4294901760, %v6849_v48 }
 0x452   :  { %v1909_v3 = vsub.f32 %v6846_v21, %v6852_v11  ;;  %v1920_v34 = vsub.f32 %v6849_v48, %v6855_v53 }
 0x454   :  { %v1910_v58 = vand.u32 4294901760, %v1909_v3  ;;  %v1921_v32 = vand.u32 4294901760, %v1920_v34  ;;  %v7792_v3 = vld [vmem:[#allocation67_spill] sm:$0xff] }
 0x455   :  { %v7793_v34 = vld [vmem:[#allocation71_spill] sm:$0xff] }
 0x456   :  { %1911 = vmatmul.mubr.f32.vlgmr.msra.gmra.mrb[4].mxu0 %v1910_v58  ;;  %3956 = vmatprep.mubr.f32.mxu1 %v1910_v58  ;;  %v7794_v58 = vld [vmem:[#allocation72_spill] sm:$0xff] }
 0x457   :  { %4553 = vmatpush1.bf16.msra.mxu0 %v7778_v25  ;;  %3957 = vmatmul.mubr.f32.vlgmr.msra.gmra.mrb[2].mxu1 %v1921_v32 }
 0x458   :  { %4745 = vmatpush3.bf16.msra.mxu1 %v7779_v4  ;;  %3991 = vmatprep.mubr.f32.mxu1 %v6841_v51  ;;  %v7797_v4 = vpack.c.bf16 %v7768_v30, %v7767_v59 }
 0x459   :  { %1916 = vmatprep.mubr.f32.mxu0 %v7780_v54  ;;  %4555 = vmatprep.subr.bf16.mxu0 %v7781_v42  ;;  %v7804_v42 = vpack.c.bf16 %v6366_v22, %v6361_v28 }
 0x45a   :  { %1922 = vmatmul.mubr.f32.gmra.mrb[6].mxu0 %v1921_v32  ;;  %4747 = vmatprep.subr.bf16.mxu1 %v6559_v63  ;;  %v7795_v32 = vld [vmem:[#allocation19_spill] sm:$0xff] }
 0x45b   :  { %4557 = vmatpush1.bf16.msra.mxu0 %v6547_v0  ;;  %2152 = vmatprep.mubr.f32.mxu0 %v7780_v54  ;;  %v7787_v0 = vld [vmem:[#allocation61_spill] sm:$0xff]  ;;  %v7796_v25 = vpack.c.bf16 %v6280_v7, %v7795_v32 }
 0x45c   :  { %4749 = vmatpush3.bf16.msra.mxu1 %v6559_v63  ;;  %4559 = vmatprep.subr.bf16.mxu0 %v6550_v46  ;;  %v7789_v63 = vld [vmem:[#allocation62_spill] sm:$0xff]  ;;  %v7790_v46 = vld [vmem:[#allocation65_spill] sm:$0xff] }
 0x45d   :  { %4751 = vmatprep.subr.bf16.mxu1 %v7782_v12 }
 0x45f   :  { %4561 = vmatpush1.bf16.msra.mxu0 %v7783_v61  ;;  %v7808_v61 = vpack.c.bf16 %v6400_v20, %v6398_v24 }
 0x460   :  { %4753 = vmatpush3.bf16.msra.mxu1 %v7782_v12  ;;  %4563 = vmatprep.subr.bf16.mxu0 %v7784_v13  ;;  %v7806_v12 = vpack.c.bf16 %v6383_v17, %v6381_v36  ;;  %v7810_v13 = vld [vmem:[#allocation35_spill] sm:$0xff] }
 0x461   :  { %4755 = vmatprep.subr.bf16.mxu1 %v7785_v40 }
 0x463   :  { %4565 = vmatpush1.bf16.msra.mxu0 %v7786_v5  ;;  %v7812_v5 = vld [vmem:[#allocation21_spill] sm:$0xff] }
 0x464   :  { %4757 = vmatpush3.bf16.msra.mxu1 %v7785_v40  ;;  %4567 = vmatprep.subr.bf16.mxu0 %v7787_v0  ;;  %v7811_v40 = vpack.c.bf16 %v6435_v14, %v7810_v13  ;;  %v7813_v0 = vld [vmem:[#allocation37_spill] sm:$0xff] }
 0x465   :  { %4759 = vmatprep.subr.bf16.mxu1 %v7788_v55 }
 0x467   :  { %4569 = vmatpush1.bf16.msra.mxu0 %v7789_v63  ;;  %v7816_v63 = vld [vmem:[#allocation27_spill] sm:$0xff] }
 0x468   :  { %4761 = vmatpush3.bf16.msra.mxu1 %v7788_v55  ;;  %4571 = vmatprep.subr.bf16.mxu0 %v7790_v46  ;;  %v7817_v46 = vld [vmem:[#allocation30_spill] sm:$0xff] }
 0x469   :  { %4763 = vmatprep.subr.bf16.mxu1 %v7791_v27 }
 0x46b   :  { %4573 = vmatpush1.bf16.msra.mxu0 %v7792_v3  ;;  %v7820_v3 = vld [vmem:[#allocation7_spill] sm:$0xff] }
 0x46c   :  { %4765 = vmatpush3.bf16.msra.mxu1 %v7791_v27  ;;  %4575 = vmatprep.subr.bf16.mxu0 %v7793_v34  ;;  %v7818_v27 = vld [vmem:[#allocation29_spill] sm:$0xff] }
 0x46d   :  { %4767 = vmatprep.subr.bf16.mxu1 %v6759_v52  ;;  %v7821_v34 = vld [vmem:[#allocation5_spill] sm:$0xff] }
 0x46f   :  { %4577 = vmatpush1.bf16.msra.mxu0 %v7794_v58  ;;  %v7823_v58 = vld [vmem:[#allocation10_spill] sm:$0xff] }
 0x470   :  { %4769 = vmatpush3.bf16.msra.mxu1 %v6759_v52  ;;  %4579 = vmatprep.subr.bf16.mxu0 %v6761_v49  ;;  %v7798_v52 = vpack.c.bf16 %v7769_v16, %v6299_v15  ;;  %v7799_v49 = vpack.c.bf16 %v6315_v19, %v6310_v62 }
 0x471   :  { %4771 = vmatprep.subr.bf16.mxu1 %v6810_v6 }
 0x473   :  { %4581 = vmatpush1.bf16.msra.mxu0 %v6784_v33  ;;  %v7802_v33 = vpack.c.bf16 %v6346_v29, %v6341_v47 }
 0x474   :  { %4773 = vmatpush3.bf16.msra.mxu1 %v6810_v6  ;;  %4583 = vmatprep.subr.bf16.mxu0 %v7796_v25  ;;  %v7801_v6 = vpack.c.bf16 %v6336_v35, %v7771_v45  ;;  %v7824_v25 = vld [vmem:[#allocation43_spill] sm:$0xff] }
 0x475   :  { %4775 = vmatprep.subr.bf16.mxu1 %v6769_v10 }
 0x476   :  { %2154 = vmatmul.mubr.f32.vlgmr.msra.gmra.mrb[4].mxu0 %v6841_v51 }
 0x477   :  { %4585 = vmatpush1.bf16.msra.mxu0 %v7797_v4  ;;  %3992 = vmatmul.mubr.f32.vlgmr.msra.gmra.mrb[2].mxu1 %v6843_v50  ;;  %v7825_v4 = vld [vmem:[#allocation42_spill] sm:$0xff] }
 0x478   :  { %4777 = vmatpush3.bf16.msra.mxu1 %v6769_v10  ;;  %4026 = vmatprep.mubr.f32.mxu1 %v6846_v21  ;;  %v7800_v10 = vpack.c.bf16 %v7770_v38, %v6320_v8 }
 0x479   :  { %2159 = vmatprep.mubr.f32.mxu0 %v7780_v54  ;;  %4587 = vmatprep.subr.bf16.mxu0 %v7798_v52  ;;  %v7826_v52 = vld [vmem:[#allocation12_spill] sm:$0xff] }
 0x47a   :  { %2161 = vmatmul.mubr.f32.gmra.mrb[6].mxu0 %v6843_v50  ;;  %4779 = vmatprep.subr.bf16.mxu1 %v6780_v43 }
 0x47b   :  { %4589 = vmatpush1.bf16.msra.mxu0 %v7799_v49  ;;  %2295 = vmatprep.mubr.f32.mxu0 %v7780_v54  ;;  %v7828_v49 = vld [vmem:[#allocation13_spill] sm:$0xff] }
 0x47c   :  { %4781 = vmatpush3.bf16.msra.mxu1 %v6780_v43  ;;  %4591 = vmatprep.subr.bf16.mxu0 %v7800_v10  ;;  %v7803_v43 = vpack.c.bf16 %v6356_v56, %v6351_v44  ;;  %v7829_v10 = vld [vmem:[#allocation15_spill] sm:$0xff] }
 0x47d   :  { %4783 = vmatprep.subr.bf16.mxu1 %v6790_v39 }
 0x47f   :  { %4593 = vmatpush1.bf16.msra.mxu0 %v7801_v6  ;;  %v7830_v6 = vld [vmem:[#allocation14_spill] sm:$0xff] }
 0x480   :  { %4785 = vmatpush3.bf16.msra.mxu1 %v6790_v39  ;;  %4595 = vmatprep.subr.bf16.mxu0 %v7802_v33  ;;  %v7805_v39 = vpack.c.bf16 %v6379_v41, %v6374_v18  ;;  %v7831_v33 = vld [vmem:[#allocation16_spill] sm:$0xff] }
 0x481   :  { %4787 = vmatprep.subr.bf16.mxu1 %v6798_v60 }
 0x483   :  { %4597 = vmatpush1.bf16.msra.mxu0 %v7803_v43  ;;  %v7832_v43 = vld [vmem:[#allocation18_spill] sm:$0xff] }
 0x484   :  { %4789 = vmatpush3.bf16.msra.mxu1 %v6798_v60  ;;  %4599 = vmatprep.subr.bf16.mxu0 %v7804_v42  ;;  %v7807_v60 = vpack.c.bf16 %v6396_v9, %v6394_v1  ;;  %v7833_v42 = vld [vmem:[#allocation17_spill] sm:$0xff] }
 0x485   :  { %4791 = vmatprep.subr.bf16.mxu1 %v6806_v37 }
 0x487   :  { %4601 = vmatpush1.bf16.msra.mxu0 %v7805_v39  ;;  %v7834_v39 = vld [vmem:[#allocation20_spill] sm:$0xff] }
 0x488   :  { %4793 = vmatpush3.bf16.msra.mxu1 %v6806_v37  ;;  %4603 = vmatprep.subr.bf16.mxu0 %v7806_v12  ;;  %v7809_v37 = vpack.c.bf16 %v6416_v31, %v6414_v26  ;;  %v7835_v12 = vld [vmem:[#allocation33_spill] sm:$0xff] }
 0x489   :  { %4795 = vmatprep.subr.bf16.mxu1 %v6816_v2 }
 0x48b   :  { %4605 = vmatpush1.bf16.msra.mxu0 %v7807_v60  ;;  %v7836_v60 = vld [vmem:[#allocation31_spill] sm:$0xff] }
 0x48c   :  { %4797 = vmatpush3.bf16.msra.mxu1 %v6816_v2  ;;  %4607 = vmatprep.subr.bf16.mxu0 %v7808_v61  ;;  %v7814_v2 = vld [vmem:[#allocation44_spill] sm:$0xff]  ;;  %v7837_v61 = vld [vmem:[#allocation34_spill] sm:$0xff] }
 0x48d   :  { %4799 = vmatprep.subr.bf16.mxu1 %v6824_v57  ;;  %v7815_v55 = vpack.c.bf16 %v7813_v0, %v7814_v2 }
 0x48f   :  { %4609 = vmatpush1.bf16.msra.mxu0 %v7809_v37  ;;  %v7838_v37 = vand.u32 4294901760, %v7795_v32  ;;  %v7849_v32 = vand.u32 4294901760, %v7769_v16  ;;  %v7857_v16 = vand.u32 4294901760, %v7770_v38  ;;  %v7864_v38 = vand.u32 4294901760, %v6341_v47 }
 0x490   :  { %4801 = vmatpush3.bf16.msra.mxu1 %v6824_v57  ;;  %4611 = vmatprep.subr.bf16.mxu0 %v7811_v40  ;;  %v7819_v57 = vld [vmem:[#allocation36_spill] sm:$0xff]  ;;  %v7839_v40 = vand.u32 4294901760, %v6280_v7  ;;  %v7848_v7 = vand.u32 4294901760, %v6299_v15  ;;  %v7856_v15 = vand.u32 4294901760, %v6320_v8  ;;  %v7873_v47 = vand.u32 4294901760, %v6366_v22 }
 0x491   :  { %4803 = vmatprep.subr.bf16.mxu1 %v7812_v5 }
 0x493   :  { %4613 = vmatpush1.bf16.msra.mxu0 %v7815_v55  ;;  %v7840_v55 = vld [vmem:[#allocation22_spill] sm:$0xff] }
 0x494   :  { %4805 = vmatpush3.bf16.msra.mxu1 %v7812_v5  ;;  %4615 = vmatprep.subr.bf16.mxu0 %v7816_v63  ;;  %v4646_v5 = vpack.c.bf16 %v7839_v40, %v7838_v37  ;;  %v4650_v37 = vpack.c.bf16 %v7849_v32, %v7848_v7 }
 0x495   :  { %4807 = vmatprep.subr.bf16.mxu1 %v7817_v46 }
 0x496   :  { %2298 = vmatmul.mubr.f32.vlgmr.msra.gmra.mrb[4].mxu0 %v6846_v21  ;;  %v7822_v21 = vld [vmem:[#allocation8_spill] sm:$0xff] }
 0x497   :  { %4617 = vmatpush1.bf16.msra.mxu0 %v7818_v27  ;;  %4027 = vmatmul.mubr.f32.vlgmr.msra.gmra.mrb[2].mxu1 %v6849_v48 }
 0x498   :  { %4809 = vmatpush3.bf16.msra.mxu1 %v7817_v46  ;;  %4061 = vmatprep.mubr.f32.mxu1 %v6852_v11 }
 0x499   :  { %2303 = vmatprep.mubr.f32.mxu0 %v7780_v54  ;;  %4619 = vmatprep.subr.bf16.mxu0 %v7819_v57 }
 0x49a   :  { %2306 = vmatmul.mubr.f32.gmra.mrb[6].mxu0 %v6849_v48  ;;  %4811 = vmatprep.subr.bf16.mxu1 %v7820_v3  ;;  %v7827_v48 = vld [vmem:[#allocation11_spill] sm:$0xff] }
 0x49b   :  { %4621 = vmatpush1.bf16.msra.mxu0 %v7821_v34  ;;  %2408 = vmatprep.mubr.f32.mxu0 %v7780_v54 }
 0x49c   :  { %4813 = vmatpush3.bf16.msra.mxu1 %v7820_v3  ;;  %4623 = vmatprep.subr.bf16.mxu0 %v7822_v21 }
 0x49d   :  { %4815 = vmatprep.subr.bf16.mxu1 %v7823_v58 }
 0x49f   :  { %4625 = vmatpush1.bf16.msra.mxu0 %v7824_v25 }
 0x4a0   :  { %4817 = vmatpush3.bf16.msra.mxu1 %v7823_v58  ;;  %4627 = vmatprep.subr.bf16.mxu0 %v7825_v4 }
 0x4a1   :  { %4819 = vmatprep.subr.bf16.mxu1 %v7826_v52 }
 0x4a3   :  { %4629 = vmatpush1.bf16.msra.mxu0 %v7827_v48 }
 0x4a4   :  { %4821 = vmatpush3.bf16.msra.mxu1 %v7826_v52  ;;  %4631 = vmatprep.subr.bf16.mxu0 %v7828_v49 }
 0x4a5   :  { %4823 = vmatprep.subr.bf16.mxu1 %v7829_v10 }
 0x4a7   :  { %4633 = vmatpush1.bf16.msra.mxu0 %v7830_v6  ;;  %v7845_v6 = vld [vmem:[#allocation39_spill] sm:$0xff] }
 0x4a8   :  { %4825 = vmatpush3.bf16.msra.mxu1 %v7829_v10  ;;  %4635 = vmatprep.subr.bf16.mxu0 %v7831_v33 }
 0x4a9   :  { %4827 = vmatprep.subr.bf16.mxu1 %v7832_v43 }
 0x4ab   :  { %4637 = vmatpush1.bf16.msra.mxu0 %v7833_v42  ;;  %v7842_v42 = vand.u32 4294901760, %v7841_v23  ;;  %v7850_v23 = vld [vmem:[#allocation46_spill] sm:$0xff] }
 0x4ac   :  { %4829 = vmatpush3.bf16.msra.mxu1 %v7832_v43  ;;  %4639 = vmatprep.subr.bf16.mxu0 %v7834_v39  ;;  %v7843_v43 = vld [vmem:[#allocation41_spill] sm:$0xff] }
 0x4ad   :  { %4831 = vmatprep.subr.bf16.mxu1 %v7835_v12  ;;  %v7844_v33 = vand.u32 4294901760, %v7843_v43  ;;  %v7852_v43 = vld [vmem:[#allocation48_spill] sm:$0xff] }
 0x4af   :  { %4641 = vmatpush1.bf16.msra.mxu0 %v7836_v60  ;;  %v4838_v39 = vpack.c.bf16 %v7844_v33, %v7842_v42  ;;  %v7846_v60 = vand.u32 4294901760, %v7767_v59  ;;  %v7851_v33 = vand.u32 4294901760, %v7850_v23  ;;  %v7853_v42 = vand.u32 4294901760, %v7852_v43  ;;  %v7866_v23 = vld [vmem:[#allocation53_spill] sm:$0xff] }
 0x4b0   :  { %4833 = vmatpush3.bf16.msra.mxu1 %v7835_v12  ;;  %4643 = vmatprep.subr.bf16.mxu0 %v7837_v61  ;;  %v7847_v12 = vand.u32 4294901760, %v7768_v30  ;;  %v7854_v59 = vand.u32 4294901760, %v6310_v62  ;;  %v7855_v30 = vand.u32 4294901760, %v6315_v19  ;;  %v7862_v62 = vand.u32 4294901760, %v7771_v45 }
 0x4b1   :  { %4835 = vmatprep.subr.bf16.mxu1 %v7840_v55  ;;  %v4842_v40 = vpack.c.bf16 %v7853_v42, %v7851_v33  ;;  %v7863_v19 = vand.u32 4294901760, %v6336_v35  ;;  %v7867_v33 = vand.u32 4294901760, %v7866_v23  ;;  %v7870_v45 = vand.u32 4294901760, %v6351_v44  ;;  %v7892_v23 = vld [vmem:[#allocation69_spill] sm:$0xff] }
 0x4b2   :  { %v4648_v10 = vpack.c.bf16 %v7847_v12, %v7846_v60  ;;  %v4652_v12 = vpack.c.bf16 %v7855_v30, %v7854_v59  ;;  %v7858_v60 = vld [vmem:[#allocation50_spill] sm:$0xff]  ;;  %v7871_v35 = vand.u32 4294901760, %v6356_v56  ;;  %v7879_v44 = vand.u32 4294901760, %v6379_v41 }
 0x4b3   :  { %4645 = vmatpush1.bf16.msra.mxu0 %v7845_v6  ;;  %v4656_v8 = vpack.c.bf16 %v7863_v19, %v7862_v62  ;;  %v7874_v30 = vld [vmem:[#allocation58_spill] sm:$0xff] }
 0x4b4   :  { %4837 = vmatpush3.bf16.msra.mxu1 %v7840_v55  ;;  %4647 = vmatprep.subr.bf16.mxu0 %v4646_v5  ;;  %v7860_v5 = vld [vmem:[#allocation51_spill] sm:$0xff]  ;;  %v4660_v59 = vpack.c.bf16 %v7871_v35, %v7870_v45  ;;  %v7898_v45 = vld [vmem:[#allocation73_spill] sm:$0xff] }
 0x4b5   :  { %4839 = vmatprep.subr.bf16.mxu1 %v4838_v39  ;;  %v7861_v7 = vand.u32 4294901760, %v7860_v5  ;;  %v7882_v5 = vld [vmem:[#allocation63_spill] sm:$0xff]  ;;  %v7899_v35 = vand.u32 4294901760, %v7898_v45 }
 0x4b6   :  { %2412 = vmatmul.mubr.f32.vlgmr.msra.gmra.mrb[4].mxu0 %v6852_v11  ;;  %v4654_v11 = vpack.c.bf16 %v7857_v16, %v7856_v15  ;;  %v7876_v15 = vld [vmem:[#allocation59_spill] sm:$0xff] }
 0x4b7   :  { %4649 = vmatpush1.bf16.msra.mxu0 %v4648_v10  ;;  %4062 = vmatmul.mubr.f32.vlgmr.msra.gmra.mrb[2].mxu1 %v6855_v53  ;;  %v7859_v10 = vand.u32 4294901760, %v7858_v60  ;;  %v7877_v16 = vand.u32 4294901760, %v7876_v15  ;;  %v7878_v60 = vand.u32 4294901760, %v6374_v18  ;;  %v7887_v18 = vand.u32 4294901760, %v6396_v9 }
 0x4b8   :  { %4841 = vmatpush3.bf16.msra.mxu1 %v4838_v39  ;;  %4096 = vmatprep.mubr.f32.mxu1 %v6841_v51  ;;  %v7865_v39 = vand.u32 4294901760, %v6346_v29 }
 0x4b9   :  { %2417 = vmatprep.mubr.f32.mxu0 %v7780_v54  ;;  %4651 = vmatprep.subr.bf16.mxu0 %v4650_v37  ;;  %v4846_v32 = vpack.c.bf16 %v7861_v7, %v7859_v10  ;;  %v4664_v56 = vpack.c.bf16 %v7879_v44, %v7878_v60  ;;  %v7880_v10 = vand.u32 4294901760, %v6381_v36  ;;  %v7883_v7 = vand.u32 4294901760, %v7882_v5 }
 0x4ba   :  { %2421 = vmatmul.mubr.f32.gmra.mrb[6].mxu0 %v6855_v53  ;;  %4843 = vmatprep.subr.bf16.mxu1 %v4842_v40  ;;  %v4658_v37 = vpack.c.bf16 %v7865_v39, %v7864_v38  ;;  %v7868_v53 = vld [vmem:[#allocation54_spill] sm:$0xff]  ;;  %v7888_v38 = vand.u32 4294901760, %v6398_v24  ;;  %v7889_v36 = vand.u32 4294901760, %v6400_v20  ;;  %v7890_v39 = vld [vmem:[#allocation68_spill] sm:$0xff]  ;;  %v7897_v24 = vand.u32 4294901760, %v6435_v14  ;;  %v7904_v14 = vld [vmem:[#allocation15_spill] sm:$0xff] }
 0x4bb   :  { %4653 = vmatpush1.bf16.msra.mxu0 %v4652_v12  ;;  %2587 = vmatprep.mubr.f32.mxu0 %v7780_v54  ;;  %v7869_v43 = vand.u32 4294901760, %v7868_v53  ;;  %v7875_v12 = vand.u32 4294901760, %v7874_v30 }
 0x4bc   :  { %4845 = vmatpush3.bf16.msra.mxu1 %v4842_v40  ;;  %4655 = vmatprep.subr.bf16.mxu0 %v4654_v11  ;;  %v7872_v40 = vand.u32 4294901760, %v6361_v28  ;;  %v7881_v28 = vand.u32 4294901760, %v6383_v17  ;;  %v4670_v17 = vpack.c.bf16 %v7889_v36, %v7888_v38 }
 0x4bd   :  { %4847 = vmatprep.subr.bf16.mxu1 %v4846_v32  ;;  %v4850_v42 = vpack.c.bf16 %v7869_v43, %v7867_v33  ;;  %v4854_v11 = vpack.c.bf16 %v7877_v16, %v7875_v12  ;;  %v7893_v33 = vand.u32 4294901760, %v7892_v23  ;;  %v7894_v43 = vand.u32 4294901760, %v6414_v26 }
 0x4be   :  { %v4662_v29 = vpack.c.bf16 %v7873_v47, %v7872_v40  ;;  %v4666_v22 = vpack.c.bf16 %v7881_v28, %v7880_v10  ;;  %v7903_v26 = vand.u32 4294901760, %v7813_v0  ;;  %v7906_v0 = vld [vmem:[#allocation16_spill] sm:$0xff] }
 0x4bf   :  { %4657 = vmatpush1.bf16.msra.mxu0 %v4656_v8  ;;  %v7886_v8 = vand.u32 4294901760, %v6394_v1  ;;  %v7895_v1 = vand.u32 4294901760, %v6416_v31 }
 0x4c0   :  { %4849 = vmatpush3.bf16.msra.mxu1 %v4846_v32  ;;  %4659 = vmatprep.subr.bf16.mxu0 %v4658_v37  ;;  %v7884_v32 = vld [vmem:[#allocation64_spill] sm:$0xff]  ;;  %v7891_v37 = vand.u32 4294901760, %v7890_v39 }
 0x4c1   :  { %4851 = vmatprep.subr.bf16.mxu1 %v4850_v42  ;;  %v7885_v62 = vand.u32 4294901760, %v7884_v32  ;;  %v4668_v41 = vpack.c.bf16 %v7887_v18, %v7886_v8  ;;  %v4672_v9 = vpack.c.bf16 %v7895_v1, %v7894_v43 }
 0x4c2   :  { %v4862_v53 = vpack.c.bf16 %v7893_v33, %v7891_v37 }
 0x4c3   :  { %4661 = vmatpush1.bf16.msra.mxu0 %v4660_v59  ;;  %v4858_v19 = vpack.c.bf16 %v7885_v62, %v7883_v7  ;;  %v7900_v59 = vld [vmem:[#allocation74_spill] sm:$0xff] }
 0x4c4   :  { %4853 = vmatpush3.bf16.msra.mxu1 %v4850_v42  ;;  %4663 = vmatprep.subr.bf16.mxu0 %v4662_v29  ;;  %v7896_v42 = vand.u32 4294901760, %v7810_v13  ;;  %v7901_v40 = vand.u32 4294901760, %v7900_v59  ;;  %v7902_v29 = vand.u32 4294901760, %v7814_v2  ;;  %v7905_v13 = vld [vmem:[#allocation14_spill] sm:$0xff] }
 0x4c5   :  { %4855 = vmatprep.subr.bf16.mxu1 %v4854_v11  ;;  %v7907_v2 = vld [vmem:[#allocation18_spill] sm:$0xff] }
 0x4c6   :  { %v4674_v20 = vpack.c.bf16 %v7897_v24, %v7896_v42  ;;  %v4866_v47 = vpack.c.bf16 %v7901_v40, %v7899_v35  ;;  %v4676_v31 = vpack.c.bf16 %v7903_v26, %v7902_v29 }
 0x4c7   :  { %4665 = vmatpush1.bf16.msra.mxu0 %v4664_v56 }
 0x4c8   :  { %4857 = vmatpush3.bf16.msra.mxu1 %v4854_v11  ;;  %4667 = vmatprep.subr.bf16.mxu0 %v4666_v22 }
 0x4c9   :  { %4859 = vmatprep.subr.bf16.mxu1 %v4858_v19 }
 0x4cb   :  { %4669 = vmatpush1.bf16.msra.mxu0 %v4668_v41 }
 0x4cc   :  { %4861 = vmatpush3.bf16.msra.mxu1 %v4858_v19  ;;  %4671 = vmatprep.subr.bf16.mxu0 %v4670_v17 }
 0x4cd   :  { %4863 = vmatprep.subr.bf16.mxu1 %v4862_v53 }
 0x4cf   :  { %4673 = vmatpush1.bf16.msra.mxu0 %v4672_v9 }
 0x4d0   :  { %4865 = vmatpush3.bf16.msra.mxu1 %v4862_v53  ;;  %4675 = vmatprep.subr.bf16.mxu0 %v4674_v20 }
 0x4d1   :  { %4867 = vmatprep.subr.bf16.mxu1 %v4866_v47 }
 0x4d3   :  { %4677 = vmatpush1.bf16.msra.mxu0 %v4676_v31 }
 0x4d4   :  { %4869 = vmatpush3.bf16.msra.mxu1 %v4866_v47  ;;  %4679 = vmatprep.subr.bf16.mxu0 %v7816_v63  ;;  %v7908_v63 = vld [vmem:[#allocation17_spill] sm:$0xff] }
 0x4d5   :  { %4871 = vmatprep.subr.bf16.mxu1 %v7817_v46 }
 0x4d6   :  { %2589 = vmatmul.mubr.f32.vlgmr.msra.gmra.mrb[4].mxu0 %v6841_v51 }
 0x4d7   :  { %4681 = vmatpush1.bf16.msra.mxu0 %v7818_v27  ;;  %4097 = vmatmul.mubr.f32.vlgmr.msra.gmra.mrb[2].mxu1 %v6843_v50  ;;  %v7910_v27 = vld [vmem:[#allocation33_spill] sm:$0xff] }
 0x4d8   :  { %4873 = vmatpush3.bf16.msra.mxu1 %v7817_v46  ;;  %4131 = vmatprep.mubr.f32.mxu1 %v6841_v51  ;;  %v7909_v46 = vld [vmem:[#allocation20_spill] sm:$0xff] }
 0x4d9   :  { %2594 = vmatprep.mubr.f32.mxu0 %v7780_v54  ;;  %4683 = vmatprep.subr.bf16.mxu0 %v7819_v57  ;;  %v7911_v57 = vld [vmem:[#allocation31_spill] sm:$0xff] }
 0x4da   :  { %2596 = vmatmul.mubr.f32.gmra.mrb[6].mxu0 %v6843_v50  ;;  %4875 = vmatprep.subr.bf16.mxu1 %v7820_v3 }
 0x4db   :  { %4685 = vmatpush1.bf16.msra.mxu0 %v7821_v34  ;;  %2698 = vmatprep.mubr.f32.mxu0 %v7780_v54 }
 0x4dc   :  { %4877 = vmatpush3.bf16.msra.mxu1 %v7820_v3  ;;  %4687 = vmatprep.subr.bf16.mxu0 %v7822_v21 }
 0x4dd   :  { %4879 = vmatprep.subr.bf16.mxu1 %v7823_v58 }
 0x4df   :  { %4689 = vmatpush1.bf16.msra.mxu0 %v7824_v25 }
 0x4e0   :  { %4881 = vmatpush3.bf16.msra.mxu1 %v7823_v58  ;;  %4691 = vmatprep.subr.bf16.mxu0 %v7825_v4 }
 0x4e1   :  { %4883 = vmatprep.subr.bf16.mxu1 %v7826_v52 }
 0x4e3   :  { %4693 = vmatpush1.bf16.msra.mxu0 %v7827_v48 }
 0x4e4   :  { %4885 = vmatpush3.bf16.msra.mxu1 %v7826_v52  ;;  %4695 = vmatprep.subr.bf16.mxu0 %v7828_v49  ;;  %v7912_v52 = vld [vmem:[#allocation32_spill] sm:$0xff] }
 0x4e5   :  { %4887 = vmatprep.subr.bf16.mxu1 %v7904_v14  ;;  %v3419_v48 = vsub.s32 3, %v7912_v52 }
 0x4e7   :  { %4697 = vmatpush1.bf16.msra.mxu0 %v7905_v13 }
 0x4e8   :  { %4889 = vmatpush3.bf16.msra.mxu1 %v7904_v14  ;;  %4699 = vmatprep.subr.bf16.mxu0 %v7906_v0 }
 0x4e9   :  { %4891 = vmatprep.subr.bf16.mxu1 %v7907_v2 }
 0x4eb   :  { %4701 = vmatpush1.bf16.msra.mxu0 %v7908_v63 }
 0x4ec   :  { %4893 = vmatpush3.bf16.msra.mxu1 %v7907_v2  ;;  %4703 = vmatprep.subr.bf16.mxu0 %v7909_v46  ;;  %v3477_v2 = vsub.s32 4, %v7912_v52 }
 0x4ed   :  { %4895 = vmatprep.subr.bf16.mxu1 %v7910_v27 }
 0x4ef   :  { %4705 = vmatpush1.bf16.msra.mxu0 %v7911_v57 }
 0x4f0   :  { %4897 = vmatpush3.bf16.msra.mxu1 %v7910_v27  ;;  %4707 = vmatprep.subr.bf16.mxu0 %v7837_v61  ;;  %v3483_v27 = vsub.s32 5, %v7912_v52 }
 0x4f1   :  { %4899 = vmatprep.subr.bf16.mxu1 %v7840_v55 }
 0x4f3   :  { %4709 = vmatpush1.bf16.msra.mxu0 %v7845_v6 }
 0x4f4   :  { %4901 = vmatpush3.bf16.msra.mxu1 %v7840_v55 }
 0x4f6   :  { %2700 = vmatmul.mubr.f32.vlgmr.msra.gmra.mrb[4].mxu0 %v6841_v51 }
 0x4f7   :  { %4132 = vmatmul.mubr.f32.vlgmr.msra.gmra.mrb[2].mxu1 %v6843_v50  ;;  %2705 = vmatprep.mubr.f32.mxu0 %v7780_v54 }
 0x4fa   :  { %2707 = vmatmul.mubr.f32.gmra.mrb[6].mxu0 %v6843_v50  ;;  %v4975_v50 = vld [vmem:[%s7177_s3] sm:$0xff] }
 0x4fb   :  { %v3420_v15 = vrot.slane %v4975_v50, %v3419_v48 }
 0x5c9   :  { %v2701_v3 = vpop.f32.mrb[4].mxu0 }
 0x5ca   :  { %v3399_v34 = vrot.slane %v2701_v3, 7  ;;  %v2703_v21 = vpop.f32.mrb[5].mxu0  ;;  %v4133_v58 = vpop.f32.mrb[2].mxu1 }
 0x5cb   :  { %v3410_v25 = vrot.slane %v4133_v58, 1  ;;  %v3387_v4 = vpop.f32.mrb[3].mxu1 }
 0x5cc   :  { %v3404_v49 = vsel %vm1672_vm0, 0.0, %v3399_v34  ;;  %v3409_v6 = vrot.slane %v3387_v4, 1 }
 0x5cd   :  { %v3405_v61 = vadd.f32 %v3404_v49, %v2703_v21  ;;  %v2708_v55 = vpop.f32.mrb[6].mxu0  ;;  %v3414_v60 = vsel %vm1683_vm1, %v3410_v25, 0.0  ;;  %v4976_v49 = vld [vmem:[%s7174_s0] sm:$0xff] }
 0x5ce   :  { %v3411_v51 = vsel %vm1683_vm1, %v3409_v6, %v3410_v25  ;;  %v3400_v30 = vrot.slane %v2708_v55, 7  ;;  %v2710_v12 = vpop.f32.mrb[7].mxu0 }
 0x5cf   :  { %v3415_v54 = vadd.f32 %v3411_v51, %v3405_v61  ;;  %v4977_v61 = vld [vmem:[%s7174_s0 + $0x8] sm:$0xff] }
 0x5d0   :  { %v3401_v16 = vsel %vm1672_vm0, %v3399_v34, %v3400_v30 }
 0x5d1   :  { %v3406_v11 = vadd.f32 %v3401_v16, %v2710_v12  ;;  %v3421_v56 = vadd.f32 %v3420_v15, %v3415_v54 }
 0x5d3   :  { %v3416_v44 = vadd.f32 %v3414_v60, %v3406_v11  ;;  %v3430_v22 = vmul.f32 %v3421_v56, %v3421_v56 }
 0x5d5   :  { %v3422_v10 = vadd.f32 %v3420_v15, %v3416_v44 }
 0x5d7   :  { %v3423_v28 = vadd.f32 %v3422_v10, %v3421_v56  ;;  %v3431_v5 = vmul.f32 %v3422_v10, %v3422_v10 }
 0x5d9   :  { %v3424_v7 = vrot.slane %v3423_v28, 4  ;;  %v3432_v32 = vadd.f32 %v3431_v5, %v3430_v22 }
 0x5db   :  { %v3425_v62 = vadd.f32 %v3424_v7, %v3423_v28  ;;  %v3433_v19 = vrot.slane %v3432_v32, 4 }
 0x5dd   :  { %v3426_v8 = vrot.slane %v3425_v62, 2  ;;  %v3434_v18 = vadd.f32 %v3433_v19, %v3432_v32 }
 0x5df   :  { %v3427_v41 = vadd.f32 %v3426_v8, %v3425_v62  ;;  %v3435_v38 = vrot.slane %v3434_v18, 2 }
 0x5e1   :  { %v3428_v36 = vrot.slane %v3427_v41, 1  ;;  %v3436_v17 = vadd.f32 %v3435_v38, %v3434_v18 }
 0x5e3   :  { %v3437_v39 = vrot.slane %v3436_v17, 1  ;;  %v3429_v37 = vadd.f32 %v3428_v36, %v3427_v41 }
 0x5e5   :  { %v3438_v23 = vadd.f32 %v3437_v39, %v3436_v17 }
 0x5e7   :  { %v3439_v33 = vsel %vm1672_vm0, %v3429_v37, %v3438_v23 }
 0x5e8   :  { %3440 = vrot.lane.b32.xlu1 %v3439_v33, %s5006_s8 }
 0x65a   :  { %v3441_v53 = vpop.permute.xlu1 %3440 }
 0x65b   :  { %v3442_v43 = vadd.f32 %v3441_v53, %v3439_v33 }
 0x65d   :  { %3443 = vrot.lane.b32.xlu0 %v3442_v43, %s5007_s9 }
 0x6cf   :  { %v3444_v1 = vpop.permute.xlu0 %3443 }
 0x6d0   :  { %v3445_v9 = vadd.f32 %v3444_v1, %v3442_v43 }
 0x6d2   :  { %3446 = vrot.lane.b32.xlu1 %v3445_v9, %s5008_s10 }
 0x744   :  { %v3447_v42 = vpop.permute.xlu1 %3446 }
 0x745   :  { %v3448_v24 = vadd.f32 %v3447_v42, %v3445_v9 }
 0x747   :  { %3449 = vrot.lane.b32.xlu0 %v3448_v24, %s5009_s11 }
 0x7b9   :  { %v3450_v20 = vpop.permute.xlu0 %3449 }
 0x7ba   :  { %v3451_v45 = vadd.f32 %v3450_v20, %v3448_v24 }
 0x7bc   :  { %3452 = vrot.lane.b32.xlu1 %v3451_v45, %s5010_s12 }
 0x82e   :  { %v3453_v35 = vpop.permute.xlu1 %3452 }
 0x82f   :  { %v3454_v59 = vadd.f32 %v3453_v35, %v3451_v45 }
 0x831   :  { %v3455_v40 = vmul.f32 0.001953125, %v3454_v59 }
 0x833   :  { %v3456_v47 = vmul.f32 %v3455_v40, %v3455_v40 }
 0x835   :  { %v3458_v29 = vrot.slane %v3456_v47, 7 }
 0x837   :  { %v3460_v26 = vsub.f32 %v3455_v40, %v3458_v29 }
 0x839   :  { %v3461_v31 = vadd.f32 1e-05, %v3460_v26 }
 0x83b   :  { %4973 = vrsqrt.f32 %v3461_v31 }
 0x845   :  { %v4974_v14 = vpop.eup %4973 }
 0x846   :  { %v3464_v13 = vrot.slane %v4974_v14, 5 }
 0x848   :  { %v3466_v0 = vmul.f32 %v4975_v50, %v3464_v13 }
 0x84a   :  { %v3468_v63 = vrot.slane %v3466_v0, 4  ;;  %v3478_v3 = vrot.slane %v3466_v0, %v3477_v2 }
 0x84c   :  { %v3470_v46 = vmul.f32 %v3468_v63, %v3455_v40  ;;  %v3479_v21 = vmul.f32 %v3478_v3, %v3421_v56  ;;  %v3480_v58 = vmul.f32 %v3478_v3, %v3422_v10 }
 0x84e   :  { %v3472_v57 = vrot.slane %v3470_v46, 3 }
 0x850   :  { %v3474_v34 = vsub.f32 %v4975_v50, %v3472_v57 }
 0x852   :  { %v3484_v25 = vrot.slane %v3474_v34, %v3483_v27 }
 0x854   :  { %v3485_v4 = vadd.f32 %v3484_v25, %v3479_v21  ;;  %v3486_v48 = vadd.f32 %v3484_v25, %v3480_v58 }
 0x856   :  { %v3487_v6 = vadd.f32 %v4976_v49, %v3485_v4  ;;  %v3488_v55 = vadd.f32 %v4977_v61, %v3486_v48 }
 0x858   :  { %v3489_v51 = vmax.f32 %v3487_v6, 0.0  ;;  %v3490_v52 = vmax.f32 %v3488_v55, 0.0 }
 0x85a   :  { %3491 = vst [vmem:[%s7178_s4] sm:$0xff] %v3489_v51  ;;  %3492 = vst [vmem:[%s7178_s4 + $0x8] sm:$0xff] %v3490_v52 }
 0x85b   :  { %3497 = vsyncpa [#allocation3], 1 }

</bundles_post_ra>
